<compile_context>
chip_gen: v7x
topology: tpu7x:2x2x1
jax: 0.10.0
libtpu: 0.0.40
codegen_flags: <defaults>
</compile_context>

<pallas_src>
import functools
import math

import jax
import jax.numpy as jnp
import numpy as np
from jax import lax
from jax.experimental import pallas as pl
from jax.experimental.pallas import tpu as pltpu


# ----------------------------------------------------------------------------
# Kernel
# ----------------------------------------------------------------------------
def _make_stack_kernel(num_heads, eps, has_mask, L_pad):
    bf16 = jnp.bfloat16

    def kernel(*args):
        if has_mask:
            (x_ref, mask_ref,
             ln1_g_ref, ln1_b_ref, w_in_ref, b_in_ref, w_o_ref, b_o_ref,
             ln2_g_ref, ln2_b_ref, w1_ref, b1_ref, w2_ref, b2_ref,
             z_ref, attn_ref, xres_ref) = args
        else:
            (x_ref,
             ln1_g_ref, ln1_b_ref, w_in_ref, b_in_ref, w_o_ref, b_o_ref,
             ln2_g_ref, ln2_b_ref, w1_ref, b1_ref, w2_ref, b2_ref,
             z_ref, attn_ref, xres_ref) = args
            mask_ref = None

        layer = pl.program_id(1)
        n_layers = pl.num_programs(1)

        B_blk, L, D = x_ref.shape
        M = B_blk * L
        dh = D // num_heads
        scale = 1.0 / math.sqrt(dh)

        # Load the residual stream from HBM only on the first layer; afterwards
        # it is carried in VMEM scratch across the ("arbitrary") layer axis.
        @pl.when(layer == 0)
        def _():
            xres_ref[...] = x_ref[...].reshape(M, D).astype(jnp.float32)

        x = xres_ref[...]                                      # (M, D) f32

        # ---- LayerNorm 1 (fp32, like the CLIP LayerNorm subclass) ----
        mu = jnp.mean(x, axis=-1, keepdims=True)
        xc = x - mu
        var = jnp.mean(xc * xc, axis=-1, keepdims=True)
        x_ln = xc * lax.rsqrt(var + eps) * ln1_g_ref[...] + ln1_b_ref[...]

        # ---- QKV: one fat (M, D) @ (D, 3D) bf16 matmul, f32 acc ----
        qkv = jnp.dot(x_ln.astype(bf16), w_in_ref[...],
                      preferred_element_type=jnp.float32) + b_in_ref[...]
        qkv3 = qkv.reshape(B_blk, L, 3 * D)

        mask = mask_ref[...] if has_mask else None             # (L, L) f32

        # ---- per-head attention (batched over the batch block) ----
        # TODO(synk): for H >= 12 switch this static unroll to
        # lax.fori_loop(unroll=2) writing o_h into a bf16 scratch to bound
        # live ranges / avoid vreg spills.
        o_heads = []
        p_sum = jnp.zeros((B_blk, L, L), jnp.float32)
        for h in range(num_heads):
            q_h = qkv3[:, :, h * dh:(h + 1) * dh].astype(bf16)
            k_h = qkv3[:, :, D + h * dh:D + (h + 1) * dh].astype(bf16)
            v_h = qkv3[:, :, 2 * D + h * dh:2 * D + (h + 1) * dh].astype(bf16)

            # scores: contract head dims directly (no materialized transpose)
            s = lax.dot_general(
                q_h, k_h,
                dimension_numbers=(((2,), (2,)), ((0,), (0,))),
                preferred_element_type=jnp.float32) * scale    # (B, L, L)
            if has_mask:
                s = s + mask
            s = s - jnp.max(s, axis=-1, keepdims=True)
            e = jnp.exp(s)
            p = e * pl.reciprocal(jnp.sum(e, axis=-1, keepdims=True),
                                  approx=True)                 # f32
            p_sum = p_sum + p

            o_h = lax.dot_general(
                p.astype(bf16), v_h,
                dimension_numbers=(((2,), (1,)), ((0,), (0,))),
                preferred_element_type=jnp.float32)            # (B, L, dh)
            o_heads.append(o_h.astype(bf16))

        # concat heads along lanes -> single K=D out-projection
        o = jnp.concatenate(o_heads, axis=-1).reshape(M, D)    # (M, D) bf16
        attn_out = jnp.dot(o, w_o_ref[...],
                           preferred_element_type=jnp.float32) + b_o_ref[...]

        # ---- residual 1 ----
        x = x + attn_out

        # ---- LayerNorm 2 ----
        mu2 = jnp.mean(x, axis=-1, keepdims=True)
        xc2 = x - mu2
        var2 = jnp.mean(xc2 * xc2, axis=-1, keepdims=True)
        x_ln2 = xc2 * lax.rsqrt(var2 + eps) * ln2_g_ref[...] + ln2_b_ref[...]

        # ---- MLP: (M, D) @ (D, 4D) -> QuickGELU -> (M, 4D) @ (4D, D) ----
        h1 = jnp.dot(x_ln2.astype(bf16), w1_ref[...],
                     preferred_element_type=jnp.float32) + b1_ref[...]
        h1 = h1 * pl.reciprocal(1.0 + jnp.exp(-1.702 * h1), approx=True)
        h2 = jnp.dot(h1.astype(bf16), w2_ref[...],
                     preferred_element_type=jnp.float32) + b2_ref[...]

        x_new = x + h2
        xres_ref[...] = x_new
        z_ref[...] = x_new.reshape(B_blk, L, D).astype(z_ref.dtype)

        # attention weights only for the last block (head-averaged), written
        # lane-dense (padded last dim).
        @pl.when(layer == n_layers - 1)
        def _():
            p_avg = p_sum * (1.0 / num_heads)                  # (B, L, L)
            if L_pad > L:
                pad = jnp.zeros((B_blk, L, L_pad - L), jnp.float32)
                p_avg = jnp.concatenate([p_avg, pad], axis=-1)
            attn_ref[...] = p_avg.astype(attn_ref.dtype)

    return kernel


# ----------------------------------------------------------------------------
# Wrapper
# ----------------------------------------------------------------------------
def _pick_batch_block(N, L, target_rows=256, max_rows=512):
    """Largest divisor of N with B_blk*L <= max_rows, preferring >= target."""
    best = 1
    for b in range(1, N + 1):
        if N % b == 0 and b * L <= max_rows:
            best = b
            if b * L >= target_rows:
                break
    return best


def _stack_params(params, dtype_w=jnp.bfloat16):
    D = params[0]["ln1_g"].shape[0]
    nL = len(params)

    def stk(name):
        return jnp.stack([p[name] for p in params])

    return dict(
        ln1_g=stk("ln1_g").reshape(nL, 1, D).astype(jnp.float32),
        ln1_b=stk("ln1_b").reshape(nL, 1, D).astype(jnp.float32),
        w_in=stk("w_in").astype(dtype_w),                      # (nL, D, 3D)
        b_in=stk("b_in").reshape(nL, 1, 3 * D).astype(jnp.float32),
        w_o=stk("w_o").astype(dtype_w),                        # (nL, D, D)
        b_o=stk("b_o").reshape(nL, 1, D).astype(jnp.float32),
        ln2_g=stk("ln2_g").reshape(nL, 1, D).astype(jnp.float32),
        ln2_b=stk("ln2_b").reshape(nL, 1, D).astype(jnp.float32),
        w1=stk("w1").astype(dtype_w),                          # (nL, D, 4D)
        b1=stk("b1").reshape(nL, 1, 4 * D).astype(jnp.float32),
        w2=stk("w2").astype(dtype_w),                          # (nL, 4D, D)
        b2=stk("b2").reshape(nL, 1, D).astype(jnp.float32),
    )


def clip_transformer_stack(x_nld, stacked, num_heads, mask=None, eps=1e-5):
    """Fused layer stack.  x_nld: (N, L, D) f32 batch-first.

    Returns:
      z_all : (layers, N, L, D) f32  per-layer block outputs (batch-first)
      attn  : (N, L, L_pad)     f32  last block's head-averaged attn (padded)
    """
    N, L, D = x_nld.shape
    n_layers = stacked["w_in"].shape[0]
    has_mask = mask is not None
    L_pad = ((L + 127) // 128) * 128

    B_blk = _pick_batch_block(N, L)
    grid = (N // B_blk, n_layers)

    kernel = _make_stack_kernel(num_heads, eps, has_mask, L_pad)

    def layer_spec(*tail):
        n_tail = len(tail)
        return pl.BlockSpec((None,) + tuple(tail),
                            lambda b, l, _n=n_tail: (l,) + (0,) * _n)

    in_specs = [pl.BlockSpec((B_blk, L, D), lambda b, l: (b, 0, 0))]   # x
    inputs = [x_nld.astype(jnp.float32)]
    if has_mask:
        in_specs.append(pl.BlockSpec((L, L), lambda b, l: (0, 0)))
        inputs.append(mask.astype(jnp.float32))
    in_specs += [
        layer_spec(1, D),            # ln1_g
        layer_spec(1, D),            # ln1_b
        layer_spec(D, 3 * D),        # w_in (bf16)
        layer_spec(1, 3 * D),        # b_in
        layer_spec(D, D),            # w_o (bf16)
        layer_spec(1, D),            # b_o
        layer_spec(1, D),            # ln2_g
        layer_spec(1, D),            # ln2_b
        layer_spec(D, 4 * D),        # w1 (bf16)
        layer_spec(1, 4 * D),        # b1
        layer_spec(4 * D, D),        # w2 (bf16)
        layer_spec(1, D),            # b2
    ]
    inputs += [
        stacked["ln1_g"], stacked["ln1_b"],
        stacked["w_in"], stacked["b_in"],
        stacked["w_o"], stacked["b_o"],
        stacked["ln2_g"], stacked["ln2_b"],
        stacked["w1"], stacked["b1"],
        stacked["w2"], stacked["b2"],
    ]

    out_specs = (
        pl.BlockSpec((None, B_blk, L, D), lambda b, l: (l, b, 0, 0)),  # z
        pl.BlockSpec((B_blk, L, L_pad), lambda b, l: (b, 0, 0)),       # attn
    )
    out_shape = (
        jax.ShapeDtypeStruct((n_layers, N, L, D), jnp.float32),
        jax.ShapeDtypeStruct((N, L, L_pad), jnp.float32),
    )

    # VMEM budget: 2x-buffered bf16 per-layer weights + f32 intermediates,
    # with headroom; v5e's default scoped limit (16 MiB) is too small at real
    # CLIP widths, v7x has only 64 MiB physical.
    w_bytes = 2 * (D * 3 * D + D * D + D * 4 * D + 4 * D * D)
    act_bytes = 4 * B_blk * L * (16 * D)
    vmem_bytes = int(min(64 * 1024 * 1024,
                         max(24 * 1024 * 1024, 3 * w_bytes + 4 * act_bytes)))

    return pl.pallas_call(
        kernel,
        out_shape=out_shape,
        grid=grid,
        in_specs=in_specs,
        out_specs=out_specs,
        scratch_shapes=[pltpu.VMEM((B_blk * L, D), jnp.float32)],
        compiler_params=pltpu.CompilerParams(
            dimension_semantics=("parallel", "arbitrary"),
            vmem_limit_bytes=vmem_bytes),
    )(*inputs)


def clip_transformer_forward(x_lnd, params, num_heads, attn_mask=None):
    """TransformerForCLIP.forward.

    x_lnd: (L, N, D) seq-first (PyTorch nn.MultiheadAttention convention).
    Returns (x (L,N,D), attention (N,L,L) of the last block, z tuple of (N,L,D)).
    """
    L, N, D = x_lnd.shape
    # TODO(synk): the (L,N,D)<->(N,L,D) permutes could be folded into the
    # first/last layer's index_map to save two HBM passes at ViT scale.
    x_nld = jnp.transpose(x_lnd, (1, 0, 2)).astype(jnp.float32)
    stacked = _stack_params(params)
    z_all, attn_pad = clip_transformer_stack(x_nld, stacked, num_heads,
                                             mask=attn_mask)
    attn = attn_pad[:, :, :L]
    z = tuple(z_all[i] for i in range(z_all.shape[0]))   # each (N, L, D)
    x_out = jnp.transpose(z_all[-1], (1, 0, 2))           # (L, N, D)
    return x_out, attn, z


# ----------------------------------------------------------------------------
# Params / pure-JAX reference
# ----------------------------------------------------------------------------
def init_clip_transformer_params(key, width, layers, heads):
    """Deterministic CLIP-like init. Linear weights stored (in, out) = W_torch.T."""
    del heads
    D = width
    std = 0.02
    params = []
    for _ in range(layers):
        key, *ks = jax.random.split(key, 13)

        def rnd(i, shape, s):
            return s * jax.random.normal(ks[i], shape, jnp.float32)

        params.append(dict(
            ln1_g=1.0 + rnd(0, (D,), 0.1),
            ln1_b=rnd(1, (D,), 0.1),
            w_in=rnd(2, (D, 3 * D), std),     # columns ordered [q | k | v]
            b_in=rnd(3, (3 * D,), 0.02),
            w_o=rnd(4, (D, D), std),
            b_o=rnd(5, (D,), 0.02),
            ln2_g=1.0 + rnd(6, (D,), 0.1),
            ln2_b=rnd(7, (D,), 0.1),
            w1=rnd(8, (D, 4 * D), std),
            b1=rnd(9, (4 * D,), 0.02),
            w2=rnd(10, (4 * D, D), std),
            b2=rnd(11, (D,), 0.02),
        ))
    return params


def _reference_forward(x_lnd, params, num_heads, attn_mask=None, eps=1e-5):
    """Pure-JAX reference with identical bf16-matmul / f32-accumulate casting."""
    L, N, D = x_lnd.shape
    dh = D // num_heads
    scale = 1.0 / math.sqrt(dh)
    bf16 = jnp.bfloat16
    mask = (jnp.zeros((L, L), jnp.float32) if attn_mask is None
            else attn_mask.astype(jnp.float32))

    def ln(v, g, b):
        mu = jnp.mean(v, axis=-1, keepdims=True)
        vc = v - mu
        var = jnp.mean(vc * vc, axis=-1, keepdims=True)
        return vc * lax.rsqrt(var + eps) * g + b

    x = x_lnd.astype(jnp.float32)          # (L, N, D)
    z = []
    attn_w = None
    for p in params:
        xn = ln(x, p["ln1_g"], p["ln1_b"])
        qkv = jnp.einsum("lnd,de->lne", xn.astype(bf16), p["w_in"].astype(bf16),
                         preferred_element_type=jnp.float32) + p["b_in"]
        q, k, v = qkv[..., :D], qkv[..., D:2 * D], qkv[..., 2 * D:]

        def split(t):   # (L, N, D) -> (N, H, L, dh)
            return t.reshape(L, N, num_heads, dh).transpose(1, 2, 0, 3)

        qh, kh, vh = (split(q).astype(bf16), split(k).astype(bf16),
                      split(v).astype(bf16))
        s = jnp.einsum("nhqd,nhkd->nhqk", qh, kh,
                       preferred_element_type=jnp.float32) * scale + mask
        s = s - jnp.max(s, axis=-1, keepdims=True)
        e = jnp.exp(s)
        pw = e / jnp.sum(e, axis=-1, keepdims=True)                 # (N,H,L,L)
        o = jnp.einsum("nhqk,nhkd->nhqd", pw.astype(bf16), vh,
                       preferred_element_type=jnp.float32)
        o = o.transpose(2, 0, 1, 3).reshape(L, N, D)
        attn_out = jnp.einsum("lnd,de->lne", o.astype(bf16),
                              p["w_o"].astype(bf16),
                              preferred_element_type=jnp.float32) + p["b_o"]
        x = x + attn_out

        xn2 = ln(x, p["ln2_g"], p["ln2_b"])
        h1 = jnp.einsum("lnd,de->lne", xn2.astype(bf16), p["w1"].astype(bf16),
                        preferred_element_type=jnp.float32) + p["b1"]
        h1 = h1 * (1.0 / (1.0 + jnp.exp(-1.702 * h1)))
        h2 = jnp.einsum("lnd,de->lne", h1.astype(bf16), p["w2"].astype(bf16),
                        preferred_element_type=jnp.float32) + p["b2"]
        x = x + h2

        z.append(jnp.transpose(x, (1, 0, 2)))
        attn_w = jnp.mean(pw, axis=1)                               # (N, L, L)
    return x, attn_w, tuple(z)


# ----------------------------------------------------------------------------
# Test
# ----------------------------------------------------------------------------
if __name__ == "__main__":
    key = jax.random.PRNGKey(0)
    kx, kp = jax.random.split(key)

    # Small CLIP-like shapes: seq=8, batch=2, width=128 (lane-dense), 4 heads,
    # 2 layers.
    L, N, D, HEADS, LAYERS = 8, 2, 128, 4, 2
    x = jax.random.normal(kx, (L, N, D), jnp.float32)
    params = init_clip_transformer_params(kp, D, LAYERS, HEADS)

    # TODO(synk): attn_mask is supported as an additive float mask; the test
    # uses None (visual-branch default of TransformerForCLIP).
    fwd = jax.jit(clip_transformer_forward, static_argnames=("num_heads",))
    out_x, out_attn, out_z = fwd(x, params, num_heads=HEADS)
    out_x = jax.block_until_ready(out_x)
    out_attn = jax.block_until_ready(out_attn)

    ref_x, ref_attn, ref_z = _reference_forward(x, params, HEADS)
    np.testing.assert_allclose(np.asarray(out_x), np.asarray(ref_x),
                               rtol=2e-3, atol=2e-3)
    np.testing.assert_allclose(np.asarray(out_attn), np.asarray(ref_attn),
                               rtol=2e-3, atol=2e-3)
    for zo, zr in zip(out_z, ref_z):
        np.testing.assert_allclose(np.asarray(zo), np.asarray(zr),
                                   rtol=2e-3, atol=2e-3)

    assert out_x.shape == (L, N, D)
    assert out_attn.shape == (N, L, L)
    assert len(out_z) == LAYERS and out_z[0].shape == (N, L, D)

    print("KERNEL_OK")
</pallas_src>

<mosaic_0001>
module attributes {stable_mosaic.version = 11 : i64} {
  func.func @kernel(%arg0: i32, %arg1: i32, %arg2: memref<2x8x128xf32, #tpu.memory_space<vmem>>, %arg3: memref<1x1x128xf32, #tpu.memory_space<vmem>>, %arg4: memref<1x1x128xf32, #tpu.memory_space<vmem>>, %arg5: memref<1x128x384xbf16, #tpu.memory_space<vmem>>, %arg6: memref<1x1x384xf32, #tpu.memory_space<vmem>>, %arg7: memref<1x128x128xbf16, #tpu.memory_space<vmem>>, %arg8: memref<1x1x128xf32, #tpu.memory_space<vmem>>, %arg9: memref<1x1x128xf32, #tpu.memory_space<vmem>>, %arg10: memref<1x1x128xf32, #tpu.memory_space<vmem>>, %arg11: memref<1x128x512xbf16, #tpu.memory_space<vmem>>, %arg12: memref<1x1x512xf32, #tpu.memory_space<vmem>>, %arg13: memref<1x512x128xbf16, #tpu.memory_space<vmem>>, %arg14: memref<1x1x128xf32, #tpu.memory_space<vmem>>, %arg15: memref<1x2x8x128xf32, #tpu.memory_space<vmem>>, %arg16: memref<2x8x128xf32, #tpu.memory_space<vmem>>, %arg17: memref<16x128xf32, #tpu.memory_space<vmem>>) attributes {dimension_semantics = [#tpu.dimension_semantics<parallel>, #tpu.dimension_semantics<arbitrary>], iteration_bounds = array<i64: 1, 2>, scalar_prefetch = 0 : i64, scratch_operands = 1 : i64, tpu.core_type = #tpu.core_type<tc>, window_params = [{transform_indices = @transform_0, window_bounds = array<i64: 2, 8, 128>}, {transform_indices = @transform_1, window_bounds = array<i64: 1, 1, 128>}, {transform_indices = @transform_2, window_bounds = array<i64: 1, 1, 128>}, {transform_indices = @transform_3, window_bounds = array<i64: 1, 128, 384>}, {transform_indices = @transform_4, window_bounds = array<i64: 1, 1, 384>}, {transform_indices = @transform_5, window_bounds = array<i64: 1, 128, 128>}, {transform_indices = @transform_6, window_bounds = array<i64: 1, 1, 128>}, {transform_indices = @transform_7, window_bounds = array<i64: 1, 1, 128>}, {transform_indices = @transform_8, window_bounds = array<i64: 1, 1, 128>}, {transform_indices = @transform_9, window_bounds = array<i64: 1, 128, 512>}, {transform_indices = @transform_10, window_bounds = array<i64: 1, 1, 512>}, {transform_indices = @transform_11, window_bounds = array<i64: 1, 512, 128>}, {transform_indices = @transform_12, window_bounds = array<i64: 1, 1, 128>}, {transform_indices = @transform_13, window_bounds = array<i64: 1, 2, 8, 128>}, {transform_indices = @transform_14, window_bounds = array<i64: 2, 8, 128>}]} {
    %c0_i32 = arith.constant 0 : i32
    %0 = arith.cmpi eq, %arg1, %c0_i32 : i32
    %1 = arith.extui %0 : i1 to i32
    %c0_i32_0 = arith.constant 0 : i32
    %2 = arith.cmpi ne, %1, %c0_i32_0 : i32
    scf.if %2 {
      %c0_81 = arith.constant 0 : index
      %c0_82 = arith.constant 0 : index
      %c0_83 = arith.constant 0 : index
      %196 = vector.load %arg2[%c0_81, %c0_82, %c0_83] : memref<2x8x128xf32, #tpu.memory_space<vmem>>, vector<2x8x128xf32>
      %197 = vector.shape_cast %196 : vector<2x8x128xf32> to vector<16x128xf32>
      %c0_84 = arith.constant 0 : index
      %c0_85 = arith.constant 0 : index
      %198 = vector.load %arg17[%c0_84, %c0_85] : memref<16x128xf32, #tpu.memory_space<vmem>>, vector<16x128xf32>
      tpu.vector_store %arg17[%c0_84, %c0_85], %197 {strides = array<i32>} : memref<16x128xf32, #tpu.memory_space<vmem>>, vector<16x128xf32>,
    } else {
    }
    %c0 = arith.constant 0 : index
    %c0_1 = arith.constant 0 : index
    %3 = vector.load %arg17[%c0, %c0_1] : memref<16x128xf32, #tpu.memory_space<vmem>>, vector<16x128xf32>
    %cst = arith.constant dense<0.000000e+00> : vector<16xf32>
    %4 = vector.multi_reduction <add>, %3, %cst [1] : vector<16x128xf32> to vector<16xf32>
    %5 = vector.shape_cast %4 : vector<16xf32> to vector<16x1xf32>
    %cst_2 = arith.constant 1.280000e+02 : f32
    %6 = vector.broadcast %cst_2 : f32 to vector<16x1xf32>
    %7 = arith.divf %5, %6 : vector<16x1xf32>
    %8 = vector.broadcast %7 : vector<16x1xf32> to vector<16x128xf32>
    %9 = arith.subf %3, %8 : vector<16x128xf32>
    %10 = arith.mulf %9, %9 : vector<16x128xf32>
    %cst_3 = arith.constant dense<0.000000e+00> : vector<16xf32>
    %11 = vector.multi_reduction <add>, %10, %cst_3 [1] : vector<16x128xf32> to vector<16xf32>
    %12 = vector.shape_cast %11 : vector<16xf32> to vector<16x1xf32>
    %cst_4 = arith.constant 1.280000e+02 : f32
    %13 = vector.broadcast %cst_4 : f32 to vector<16x1xf32>
    %14 = arith.divf %12, %13 : vector<16x1xf32>
    %cst_5 = arith.constant 9.99999974E-6 : f32
    %15 = vector.broadcast %cst_5 : f32 to vector<16x1xf32>
    %16 = arith.addf %14, %15 : vector<16x1xf32>
    %17 = math.rsqrt %16 : vector<16x1xf32>
    %18 = vector.broadcast %17 : vector<16x1xf32> to vector<16x128xf32>
    %19 = arith.mulf %9, %18 : vector<16x128xf32>
    %c0_6 = arith.constant 0 : index
    %c0_7 = arith.constant 0 : index
    %c0_8 = arith.constant 0 : index
    %20 = vector.load %arg3[%c0_6, %c0_7, %c0_8] : memref<1x1x128xf32, #tpu.memory_space<vmem>>, vector<1x1x128xf32>
    %21 = vector.shape_cast %20 : vector<1x1x128xf32> to vector<1x128xf32>
    %22 = vector.broadcast %21 : vector<1x128xf32> to vector<16x128xf32>
    %23 = arith.mulf %19, %22 : vector<16x128xf32>
    %c0_9 = arith.constant 0 : index
    %c0_10 = arith.constant 0 : index
    %c0_11 = arith.constant 0 : index
    %24 = vector.load %arg4[%c0_9, %c0_10, %c0_11] : memref<1x1x128xf32, #tpu.memory_space<vmem>>, vector<1x1x128xf32>
    %25 = vector.shape_cast %24 : vector<1x1x128xf32> to vector<1x128xf32>
    %26 = vector.broadcast %25 : vector<1x128xf32> to vector<16x128xf32>
    %27 = arith.addf %23, %26 : vector<16x128xf32>
    %28 = arith.truncf %27 : vector<16x128xf32> to vector<16x128xbf16>
    %c0_12 = arith.constant 0 : index
    %c0_13 = arith.constant 0 : index
    %c0_14 = arith.constant 0 : index
    %29 = vector.load %arg5[%c0_12, %c0_13, %c0_14] : memref<1x128x384xbf16, #tpu.memory_space<vmem>>, vector<1x128x384xbf16>
    %30 = vector.shape_cast %29 : vector<1x128x384xbf16> to vector<128x384xbf16>
    %cst_15 = arith.constant dense<0.000000e+00> : vector<16x384xf32>
    %31 = tpu.matmul %28, %30, %cst_15 {dimension_numbers = #tpu.dot_dimension_numbers<[1], [0], [0], [1], [0, 0, 1, 1], [], []>} : vector<16x128xbf16>, vector<128x384xbf16>, vector<16x384xf32> -> vector<16x384xf32>
    %c0_16 = arith.constant 0 : index
    %c0_17 = arith.constant 0 : index
    %c0_18 = arith.constant 0 : index
    %32 = vector.load %arg6[%c0_16, %c0_17, %c0_18] : memref<1x1x384xf32, #tpu.memory_space<vmem>>, vector<1x1x384xf32>
    %33 = vector.shape_cast %32 : vector<1x1x384xf32> to vector<1x384xf32>
    %34 = vector.broadcast %33 : vector<1x384xf32> to vector<16x384xf32>
    %35 = arith.addf %31, %34 : vector<16x384xf32>
    %36 = vector.shape_cast %35 : vector<16x384xf32> to vector<2x8x384xf32>
    %cst_19 = arith.constant 0.000000e+00 : f32
    %37 = vector.broadcast %cst_19 : f32 to vector<2x8x8xf32>
    %38 = vector.extract_strided_slice %36 {offsets = [0, 0, 0], sizes = [2, 8, 32], strides = [1, 1, 1]} : vector<2x8x384xf32> to vector<2x8x32xf32>
    %39 = arith.truncf %38 : vector<2x8x32xf32> to vector<2x8x32xbf16>
    %40 = vector.extract_strided_slice %36 {offsets = [0, 0, 128], sizes = [2, 8, 32], strides = [1, 1, 1]} : vector<2x8x384xf32> to vector<2x8x32xf32>
    %41 = arith.truncf %40 : vector<2x8x32xf32> to vector<2x8x32xbf16>
    %42 = vector.extract_strided_slice %36 {offsets = [0, 0, 256], sizes = [2, 8, 32], strides = [1, 1, 1]} : vector<2x8x384xf32> to vector<2x8x32xf32>
    %43 = arith.truncf %42 : vector<2x8x32xf32> to vector<2x8x32xbf16>
    %cst_20 = arith.constant dense<0.000000e+00> : vector<2x8x8xf32>
    %44 = tpu.matmul %39, %41, %cst_20 {dimension_numbers = #tpu.dot_dimension_numbers<[2], [2], [1], [1], [0, 0, 0, 1, 1, 1], [0], [0]>} : vector<2x8x32xbf16>, vector<2x8x32xbf16>, vector<2x8x8xf32> -> vector<2x8x8xf32>
    %cst_21 = arith.constant 0.176776692 : f32
    %45 = vector.broadcast %cst_21 : f32 to vector<2x8x8xf32>
    %46 = arith.mulf %44, %45 : vector<2x8x8xf32>
    %cst_22 = arith.constant dense<0xFF800000> : vector<2x8xf32>
    %47 = vector.multi_reduction <maximumf>, %46, %cst_22 [2] : vector<2x8x8xf32> to vector<2x8xf32>
    %48 = vector.shape_cast %47 : vector<2x8xf32> to vector<2x8x1xf32>
    %49 = vector.broadcast %48 : vector<2x8x1xf32> to vector<2x8x8xf32>
    %50 = arith.subf %46, %49 : vector<2x8x8xf32>
    %51 = math.exp %50 : vector<2x8x8xf32>
    %cst_23 = arith.constant dense<0.000000e+00> : vector<2x8xf32>
    %52 = vector.multi_reduction <add>, %51, %cst_23 [2] : vector<2x8x8xf32> to vector<2x8xf32>
    %53 = vector.shape_cast %52 : vector<2x8xf32> to vector<2x8x1xf32>
    %54 = tpu.reciprocal %53 {approx = true} : vector<2x8x1xf32> -> vector<2x8x1xf32>
    %55 = vector.broadcast %54 : vector<2x8x1xf32> to vector<2x8x8xf32>
    %56 = arith.mulf %51, %55 : vector<2x8x8xf32>
    %57 = arith.addf %37, %56 : vector<2x8x8xf32>
    %58 = arith.truncf %56 : vector<2x8x8xf32> to vector<2x8x8xbf16>
    %cst_24 = arith.constant dense<0.000000e+00> : vector<2x8x32xf32>
    %59 = tpu.matmul %58, %43, %cst_24 {dimension_numbers = #tpu.dot_dimension_numbers<[2], [1], [1], [2], [0, 0, 0, 1, 1, 2], [0], [0]>} : vector<2x8x8xbf16>, vector<2x8x32xbf16>, vector<2x8x32xf32> -> vector<2x8x32xf32>
    %60 = arith.truncf %59 : vector<2x8x32xf32> to vector<2x8x32xbf16>
    %61 = vector.extract_strided_slice %36 {offsets = [0, 0, 32], sizes = [2, 8, 32], strides = [1, 1, 1]} : vector<2x8x384xf32> to vector<2x8x32xf32>
    %62 = arith.truncf %61 : vector<2x8x32xf32> to vector<2x8x32xbf16>
    %63 = vector.extract_strided_slice %36 {offsets = [0, 0, 160], sizes = [2, 8, 32], strides = [1, 1, 1]} : vector<2x8x384xf32> to vector<2x8x32xf32>
    %64 = arith.truncf %63 : vector<2x8x32xf32> to vector<2x8x32xbf16>
    %65 = vector.extract_strided_slice %36 {offsets = [0, 0, 288], sizes = [2, 8, 32], strides = [1, 1, 1]} : vector<2x8x384xf32> to vector<2x8x32xf32>
    %66 = arith.truncf %65 : vector<2x8x32xf32> to vector<2x8x32xbf16>
    %cst_25 = arith.constant dense<0.000000e+00> : vector<2x8x8xf32>
    %67 = tpu.matmul %62, %64, %cst_25 {dimension_numbers = #tpu.dot_dimension_numbers<[2], [2], [1], [1], [0, 0, 0, 1, 1, 1], [0], [0]>} : vector<2x8x32xbf16>, vector<2x8x32xbf16>, vector<2x8x8xf32> -> vector<2x8x8xf32>
    %cst_26 = arith.constant 0.176776692 : f32
    %68 = vector.broadcast %cst_26 : f32 to vector<2x8x8xf32>
    %69 = arith.mulf %67, %68 : vector<2x8x8xf32>
    %cst_27 = arith.constant dense<0xFF800000> : vector<2x8xf32>
    %70 = vector.multi_reduction <maximumf>, %69, %cst_27 [2] : vector<2x8x8xf32> to vector<2x8xf32>
    %71 = vector.shape_cast %70 : vector<2x8xf32> to vector<2x8x1xf32>
    %72 = vector.broadcast %71 : vector<2x8x1xf32> to vector<2x8x8xf32>
    %73 = arith.subf %69, %72 : vector<2x8x8xf32>
    %74 = math.exp %73 : vector<2x8x8xf32>
    %cst_28 = arith.constant dense<0.000000e+00> : vector<2x8xf32>
    %75 = vector.multi_reduction <add>, %74, %cst_28 [2] : vector<2x8x8xf32> to vector<2x8xf32>
    %76 = vector.shape_cast %75 : vector<2x8xf32> to vector<2x8x1xf32>
    %77 = tpu.reciprocal %76 {approx = true} : vector<2x8x1xf32> -> vector<2x8x1xf32>
    %78 = vector.broadcast %77 : vector<2x8x1xf32> to vector<2x8x8xf32>
    %79 = arith.mulf %74, %78 : vector<2x8x8xf32>
    %80 = arith.addf %57, %79 : vector<2x8x8xf32>
    %81 = arith.truncf %79 : vector<2x8x8xf32> to vector<2x8x8xbf16>
    %cst_29 = arith.constant dense<0.000000e+00> : vector<2x8x32xf32>
    %82 = tpu.matmul %81, %66, %cst_29 {dimension_numbers = #tpu.dot_dimension_numbers<[2], [1], [1], [2], [0, 0, 0, 1, 1, 2], [0], [0]>} : vector<2x8x8xbf16>, vector<2x8x32xbf16>, vector<2x8x32xf32> -> vector<2x8x32xf32>
    %83 = arith.truncf %82 : vector<2x8x32xf32> to vector<2x8x32xbf16>
    %84 = vector.extract_strided_slice %36 {offsets = [0, 0, 64], sizes = [2, 8, 32], strides = [1, 1, 1]} : vector<2x8x384xf32> to vector<2x8x32xf32>
    %85 = arith.truncf %84 : vector<2x8x32xf32> to vector<2x8x32xbf16>
    %86 = vector.extract_strided_slice %36 {offsets = [0, 0, 192], sizes = [2, 8, 32], strides = [1, 1, 1]} : vector<2x8x384xf32> to vector<2x8x32xf32>
    %87 = arith.truncf %86 : vector<2x8x32xf32> to vector<2x8x32xbf16>
    %88 = vector.extract_strided_slice %36 {offsets = [0, 0, 320], sizes = [2, 8, 32], strides = [1, 1, 1]} : vector<2x8x384xf32> to vector<2x8x32xf32>
    %89 = arith.truncf %88 : vector<2x8x32xf32> to vector<2x8x32xbf16>
    %cst_30 = arith.constant dense<0.000000e+00> : vector<2x8x8xf32>
    %90 = tpu.matmul %85, %87, %cst_30 {dimension_numbers = #tpu.dot_dimension_numbers<[2], [2], [1], [1], [0, 0, 0, 1, 1, 1], [0], [0]>} : vector<2x8x32xbf16>, vector<2x8x32xbf16>, vector<2x8x8xf32> -> vector<2x8x8xf32>
    %cst_31 = arith.constant 0.176776692 : f32
    %91 = vector.broadcast %cst_31 : f32 to vector<2x8x8xf32>
    %92 = arith.mulf %90, %91 : vector<2x8x8xf32>
    %cst_32 = arith.constant dense<0xFF800000> : vector<2x8xf32>
    %93 = vector.multi_reduction <maximumf>, %92, %cst_32 [2] : vector<2x8x8xf32> to vector<2x8xf32>
    %94 = vector.shape_cast %93 : vector<2x8xf32> to vector<2x8x1xf32>
    %95 = vector.broadcast %94 : vector<2x8x1xf32> to vector<2x8x8xf32>
    %96 = arith.subf %92, %95 : vector<2x8x8xf32>
    %97 = math.exp %96 : vector<2x8x8xf32>
    %cst_33 = arith.constant dense<0.000000e+00> : vector<2x8xf32>
    %98 = vector.multi_reduction <add>, %97, %cst_33 [2] : vector<2x8x8xf32> to vector<2x8xf32>
    %99 = vector.shape_cast %98 : vector<2x8xf32> to vector<2x8x1xf32>
    %100 = tpu.reciprocal %99 {approx = true} : vector<2x8x1xf32> -> vector<2x8x1xf32>
    %101 = vector.broadcast %100 : vector<2x8x1xf32> to vector<2x8x8xf32>
    %102 = arith.mulf %97, %101 : vector<2x8x8xf32>
    %103 = arith.addf %80, %102 : vector<2x8x8xf32>
    %104 = arith.truncf %102 : vector<2x8x8xf32> to vector<2x8x8xbf16>
    %cst_34 = arith.constant dense<0.000000e+00> : vector<2x8x32xf32>
    %105 = tpu.matmul %104, %89, %cst_34 {dimension_numbers = #tpu.dot_dimension_numbers<[2], [1], [1], [2], [0, 0, 0, 1, 1, 2], [0], [0]>} : vector<2x8x8xbf16>, vector<2x8x32xbf16>, vector<2x8x32xf32> -> vector<2x8x32xf32>
    %106 = arith.truncf %105 : vector<2x8x32xf32> to vector<2x8x32xbf16>
    %107 = vector.extract_strided_slice %36 {offsets = [0, 0, 96], sizes = [2, 8, 32], strides = [1, 1, 1]} : vector<2x8x384xf32> to vector<2x8x32xf32>
    %108 = arith.truncf %107 : vector<2x8x32xf32> to vector<2x8x32xbf16>
    %109 = vector.extract_strided_slice %36 {offsets = [0, 0, 224], sizes = [2, 8, 32], strides = [1, 1, 1]} : vector<2x8x384xf32> to vector<2x8x32xf32>
    %110 = arith.truncf %109 : vector<2x8x32xf32> to vector<2x8x32xbf16>
    %111 = vector.extract_strided_slice %36 {offsets = [0, 0, 352], sizes = [2, 8, 32], strides = [1, 1, 1]} : vector<2x8x384xf32> to vector<2x8x32xf32>
    %112 = arith.truncf %111 : vector<2x8x32xf32> to vector<2x8x32xbf16>
    %cst_35 = arith.constant dense<0.000000e+00> : vector<2x8x8xf32>
    %113 = tpu.matmul %108, %110, %cst_35 {dimension_numbers = #tpu.dot_dimension_numbers<[2], [2], [1], [1], [0, 0, 0, 1, 1, 1], [0], [0]>} : vector<2x8x32xbf16>, vector<2x8x32xbf16>, vector<2x8x8xf32> -> vector<2x8x8xf32>
    %cst_36 = arith.constant 0.176776692 : f32
    %114 = vector.broadcast %cst_36 : f32 to vector<2x8x8xf32>
    %115 = arith.mulf %113, %114 : vector<2x8x8xf32>
    %cst_37 = arith.constant dense<0xFF800000> : vector<2x8xf32>
    %116 = vector.multi_reduction <maximumf>, %115, %cst_37 [2] : vector<2x8x8xf32> to vector<2x8xf32>
    %117 = vector.shape_cast %116 : vector<2x8xf32> to vector<2x8x1xf32>
    %118 = vector.broadcast %117 : vector<2x8x1xf32> to vector<2x8x8xf32>
    %119 = arith.subf %115, %118 : vector<2x8x8xf32>
    %120 = math.exp %119 : vector<2x8x8xf32>
    %cst_38 = arith.constant dense<0.000000e+00> : vector<2x8xf32>
    %121 = vector.multi_reduction <add>, %120, %cst_38 [2] : vector<2x8x8xf32> to vector<2x8xf32>
    %122 = vector.shape_cast %121 : vector<2x8xf32> to vector<2x8x1xf32>
    %123 = tpu.reciprocal %122 {approx = true} : vector<2x8x1xf32> -> vector<2x8x1xf32>
    %124 = vector.broadcast %123 : vector<2x8x1xf32> to vector<2x8x8xf32>
    %125 = arith.mulf %120, %124 : vector<2x8x8xf32>
    %126 = arith.addf %103, %125 : vector<2x8x8xf32>
    %127 = arith.truncf %125 : vector<2x8x8xf32> to vector<2x8x8xbf16>
    %cst_39 = arith.constant dense<0.000000e+00> : vector<2x8x32xf32>
    %128 = tpu.matmul %127, %112, %cst_39 {dimension_numbers = #tpu.dot_dimension_numbers<[2], [1], [1], [2], [0, 0, 0, 1, 1, 2], [0], [0]>} : vector<2x8x8xbf16>, vector<2x8x32xbf16>, vector<2x8x32xf32> -> vector<2x8x32xf32>
    %129 = arith.truncf %128 : vector<2x8x32xf32> to vector<2x8x32xbf16>
    %130 = tpu.concatenate %60, %83, %106, %129 in 2 : vector<2x8x32xbf16>, vector<2x8x32xbf16>, vector<2x8x32xbf16>, vector<2x8x32xbf16> -> vector<2x8x128xbf16>
    %131 = vector.shape_cast %130 : vector<2x8x128xbf16> to vector<16x128xbf16>
    %c0_40 = arith.constant 0 : index
    %c0_41 = arith.constant 0 : index
    %c0_42 = arith.constant 0 : index
    %132 = vector.load %arg7[%c0_40, %c0_41, %c0_42] : memref<1x128x128xbf16, #tpu.memory_space<vmem>>, vector<1x128x128xbf16>
    %133 = vector.shape_cast %132 : vector<1x128x128xbf16> to vector<128x128xbf16>
    %cst_43 = arith.constant dense<0.000000e+00> : vector<16x128xf32>
    %134 = tpu.matmul %131, %133, %cst_43 {dimension_numbers = #tpu.dot_dimension_numbers<[1], [0], [0], [1], [0, 0, 1, 1], [], []>} : vector<16x128xbf16>, vector<128x128xbf16>, vector<16x128xf32> -> vector<16x128xf32>
    %c0_44 = arith.constant 0 : index
    %c0_45 = arith.constant 0 : index
    %c0_46 = arith.constant 0 : index
    %135 = vector.load %arg8[%c0_44, %c0_45, %c0_46] : memref<1x1x128xf32, #tpu.memory_space<vmem>>, vector<1x1x128xf32>
    %136 = vector.shape_cast %135 : vector<1x1x128xf32> to vector<1x128xf32>
    %137 = vector.broadcast %136 : vector<1x128xf32> to vector<16x128xf32>
    %138 = arith.addf %134, %137 : vector<16x128xf32>
    %139 = arith.addf %3, %138 : vector<16x128xf32>
    %cst_47 = arith.constant dense<0.000000e+00> : vector<16xf32>
    %140 = vector.multi_reduction <add>, %139, %cst_47 [1] : vector<16x128xf32> to vector<16xf32>
    %141 = vector.shape_cast %140 : vector<16xf32> to vector<16x1xf32>
    %cst_48 = arith.constant 1.280000e+02 : f32
    %142 = vector.broadcast %cst_48 : f32 to vector<16x1xf32>
    %143 = arith.divf %141, %142 : vector<16x1xf32>
    %144 = vector.broadcast %143 : vector<16x1xf32> to vector<16x128xf32>
    %145 = arith.subf %139, %144 : vector<16x128xf32>
    %146 = arith.mulf %145, %145 : vector<16x128xf32>
    %cst_49 = arith.constant dense<0.000000e+00> : vector<16xf32>
    %147 = vector.multi_reduction <add>, %146, %cst_49 [1] : vector<16x128xf32> to vector<16xf32>
    %148 = vector.shape_cast %147 : vector<16xf32> to vector<16x1xf32>
    %cst_50 = arith.constant 1.280000e+02 : f32
    %149 = vector.broadcast %cst_50 : f32 to vector<16x1xf32>
    %150 = arith.divf %148, %149 : vector<16x1xf32>
    %cst_51 = arith.constant 9.99999974E-6 : f32
    %151 = vector.broadcast %cst_51 : f32 to vector<16x1xf32>
    %152 = arith.addf %150, %151 : vector<16x1xf32>
    %153 = math.rsqrt %152 : vector<16x1xf32>
    %154 = vector.broadcast %153 : vector<16x1xf32> to vector<16x128xf32>
    %155 = arith.mulf %145, %154 : vector<16x128xf32>
    %c0_52 = arith.constant 0 : index
    %c0_53 = arith.constant 0 : index
    %c0_54 = arith.constant 0 : index
    %156 = vector.load %arg9[%c0_52, %c0_53, %c0_54] : memref<1x1x128xf32, #tpu.memory_space<vmem>>, vector<1x1x128xf32>
    %157 = vector.shape_cast %156 : vector<1x1x128xf32> to vector<1x128xf32>
    %158 = vector.broadcast %157 : vector<1x128xf32> to vector<16x128xf32>
    %159 = arith.mulf %155, %158 : vector<16x128xf32>
    %c0_55 = arith.constant 0 : index
    %c0_56 = arith.constant 0 : index
    %c0_57 = arith.constant 0 : index
    %160 = vector.load %arg10[%c0_55, %c0_56, %c0_57] : memref<1x1x128xf32, #tpu.memory_space<vmem>>, vector<1x1x128xf32>
    %161 = vector.shape_cast %160 : vector<1x1x128xf32> to vector<1x128xf32>
    %162 = vector.broadcast %161 : vector<1x128xf32> to vector<16x128xf32>
    %163 = arith.addf %159, %162 : vector<16x128xf32>
    %164 = arith.truncf %163 : vector<16x128xf32> to vector<16x128xbf16>
    %c0_58 = arith.constant 0 : index
    %c0_59 = arith.constant 0 : index
    %c0_60 = arith.constant 0 : index
    %165 = vector.load %arg11[%c0_58, %c0_59, %c0_60] : memref<1x128x512xbf16, #tpu.memory_space<vmem>>, vector<1x128x512xbf16>
    %166 = vector.shape_cast %165 : vector<1x128x512xbf16> to vector<128x512xbf16>
    %cst_61 = arith.constant dense<0.000000e+00> : vector<16x512xf32>
    %167 = tpu.matmul %164, %166, %cst_61 {dimension_numbers = #tpu.dot_dimension_numbers<[1], [0], [0], [1], [0, 0, 1, 1], [], []>} : vector<16x128xbf16>, vector<128x512xbf16>, vector<16x512xf32> -> vector<16x512xf32>
    %c0_62 = arith.constant 0 : index
    %c0_63 = arith.constant 0 : index
    %c0_64 = arith.constant 0 : index
    %168 = vector.load %arg12[%c0_62, %c0_63, %c0_64] : memref<1x1x512xf32, #tpu.memory_space<vmem>>, vector<1x1x512xf32>
    %169 = vector.shape_cast %168 : vector<1x1x512xf32> to vector<1x512xf32>
    %170 = vector.broadcast %169 : vector<1x512xf32> to vector<16x512xf32>
    %171 = arith.addf %167, %170 : vector<16x512xf32>
    %cst_65 = arith.constant -1.702000e+00 : f32
    %172 = vector.broadcast %cst_65 : f32 to vector<16x512xf32>
    %173 = arith.mulf %172, %171 : vector<16x512xf32>
    %174 = math.exp %173 : vector<16x512xf32>
    %cst_66 = arith.constant 1.000000e+00 : f32
    %175 = vector.broadcast %cst_66 : f32 to vector<16x512xf32>
    %176 = arith.addf %175, %174 : vector<16x512xf32>
    %177 = tpu.reciprocal %176 {approx = true} : vector<16x512xf32> -> vector<16x512xf32>
    %178 = arith.mulf %171, %177 : vector<16x512xf32>
    %179 = arith.truncf %178 : vector<16x512xf32> to vector<16x512xbf16>
    %c0_67 = arith.constant 0 : index
    %c0_68 = arith.constant 0 : index
    %c0_69 = arith.constant 0 : index
    %180 = vector.load %arg13[%c0_67, %c0_68, %c0_69] : memref<1x512x128xbf16, #tpu.memory_space<vmem>>, vector<1x512x128xbf16>
    %181 = vector.shape_cast %180 : vector<1x512x128xbf16> to vector<512x128xbf16>
    %cst_70 = arith.constant dense<0.000000e+00> : vector<16x128xf32>
    %182 = tpu.matmul %179, %181, %cst_70 {dimension_numbers = #tpu.dot_dimension_numbers<[1], [0], [0], [1], [0, 0, 1, 1], [], []>} : vector<16x512xbf16>, vector<512x128xbf16>, vector<16x128xf32> -> vector<16x128xf32>
    %c0_71 = arith.constant 0 : index
    %c0_72 = arith.constant 0 : index
    %c0_73 = arith.constant 0 : index
    %183 = vector.load %arg14[%c0_71, %c0_72, %c0_73] : memref<1x1x128xf32, #tpu.memory_space<vmem>>, vector<1x1x128xf32>
    %184 = vector.shape_cast %183 : vector<1x1x128xf32> to vector<1x128xf32>
    %185 = vector.broadcast %184 : vector<1x128xf32> to vector<16x128xf32>
    %186 = arith.addf %182, %185 : vector<16x128xf32>
    %187 = arith.addf %139, %186 : vector<16x128xf32>
    %c0_74 = arith.constant 0 : index
    %c0_75 = arith.constant 0 : index
    %188 = vector.load %arg17[%c0_74, %c0_75] : memref<16x128xf32, #tpu.memory_space<vmem>>, vector<16x128xf32>
    tpu.vector_store %arg17[%c0_74, %c0_75], %187 {strides = array<i32>} : memref<16x128xf32, #tpu.memory_space<vmem>>, vector<16x128xf32>,
    %189 = vector.shape_cast %187 : vector<16x128xf32> to vector<2x8x128xf32>
    %c0_76 = arith.constant 0 : index
    %c0_77 = arith.constant 0 : index
    %c0_78 = arith.constant 0 : index
    %c0_79 = arith.constant 0 : index
    %190 = vector.load %arg15[%c0_76, %c0_77, %c0_78, %c0_79] : memref<1x2x8x128xf32, #tpu.memory_space<vmem>>, vector<1x2x8x128xf32>
    %191 = vector.shape_cast %190 : vector<1x2x8x128xf32> to vector<2x8x128xf32>
    %192 = vector.shape_cast %189 : vector<2x8x128xf32> to vector<1x2x8x128xf32>
    tpu.vector_store %arg15[%c0_76, %c0_77, %c0_78, %c0_79], %192 {strides = array<i32>} : memref<1x2x8x128xf32, #tpu.memory_space<vmem>>, vector<1x2x8x128xf32>,
    %c1_i32 = arith.constant 1 : i32
    %193 = arith.cmpi eq, %arg1, %c1_i32 : i32
    %194 = arith.extui %193 : i1 to i32
    %c0_i32_80 = arith.constant 0 : i32
    %195 = arith.cmpi ne, %194, %c0_i32_80 : i32
    scf.if %195 {
      %cst_81 = arith.constant 2.500000e-01 : f32
      %196 = vector.broadcast %cst_81 : f32 to vector<2x8x8xf32>
      %197 = arith.mulf %126, %196 : vector<2x8x8xf32>
      %cst_82 = arith.constant 0.000000e+00 : f32
      %198 = vector.broadcast %cst_82 : f32 to vector<2x8x120xf32>
      %199 = tpu.concatenate %197, %198 in 2 : vector<2x8x8xf32>, vector<2x8x120xf32> -> vector<2x8x128xf32>
      %c0_83 = arith.constant 0 : index
      %c0_84 = arith.constant 0 : index
      %c0_85 = arith.constant 0 : index
      %200 = vector.load %arg16[%c0_83, %c0_84, %c0_85] : memref<2x8x128xf32, #tpu.memory_space<vmem>>, vector<2x8x128xf32>
      tpu.vector_store %arg16[%c0_83, %c0_84, %c0_85], %199 {strides = array<i32>} : memref<2x8x128xf32, #tpu.memory_space<vmem>>, vector<2x8x128xf32>,
    } else {
    }
    return
  }
  func.func @transform_0(%arg0: i32, %arg1: i32) -> (i32, i32, i32) {
    %c0_i32 = arith.constant 0 : i32
    %c0_i32_0 = arith.constant 0 : i32
    %c0_i32_1 = arith.constant 0 : i32
    return %arg0, %c0_i32, %c0_i32_0 : i32, i32, i32
  }
  func.func @transform_1(%arg0: i32, %arg1: i32) -> (i32, i32, i32) {
    %c0_i32 = arith.constant 0 : i32
    %c0_i32_0 = arith.constant 0 : i32
    %c0_i32_1 = arith.constant 0 : i32
    return %arg1, %c0_i32, %c0_i32_0 : i32, i32, i32
  }
  func.func @transform_2(%arg0: i32, %arg1: i32) -> (i32, i32, i32) {
    %c0_i32 = arith.constant 0 : i32
    %c0_i32_0 = arith.constant 0 : i32
    %c0_i32_1 = arith.constant 0 : i32
    return %arg1, %c0_i32, %c0_i32_0 : i32, i32, i32
  }
  func.func @transform_3(%arg0: i32, %arg1: i32) -> (i32, i32, i32) {
    %c0_i32 = arith.constant 0 : i32
    %c0_i32_0 = arith.constant 0 : i32
    %c0_i32_1 = arith.constant 0 : i32
    return %arg1, %c0_i32, %c0_i32_0 : i32, i32, i32
  }
  func.func @transform_4(%arg0: i32, %arg1: i32) -> (i32, i32, i32) {
    %c0_i32 = arith.constant 0 : i32
    %c0_i32_0 = arith.constant 0 : i32
    %c0_i32_1 = arith.constant 0 : i32
    return %arg1, %c0_i32, %c0_i32_0 : i32, i32, i32
  }
  func.func @transform_5(%arg0: i32, %arg1: i32) -> (i32, i32, i32) {
    %c0_i32 = arith.constant 0 : i32
    %c0_i32_0 = arith.constant 0 : i32
    %c0_i32_1 = arith.constant 0 : i32
    return %arg1, %c0_i32, %c0_i32_0 : i32, i32, i32
  }
  func.func @transform_6(%arg0: i32, %arg1: i32) -> (i32, i32, i32) {
    %c0_i32 = arith.constant 0 : i32
    %c0_i32_0 = arith.constant 0 : i32
    %c0_i32_1 = arith.constant 0 : i32
    return %arg1, %c0_i32, %c0_i32_0 : i32, i32, i32
  }
  func.func @transform_7(%arg0: i32, %arg1: i32) -> (i32, i32, i32) {
    %c0_i32 = arith.constant 0 : i32
    %c0_i32_0 = arith.constant 0 : i32
    %c0_i32_1 = arith.constant 0 : i32
    return %arg1, %c0_i32, %c0_i32_0 : i32, i32, i32
  }
  func.func @transform_8(%arg0: i32, %arg1: i32) -> (i32, i32, i32) {
    %c0_i32 = arith.constant 0 : i32
    %c0_i32_0 = arith.constant 0 : i32
    %c0_i32_1 = arith.constant 0 : i32
    return %arg1, %c0_i32, %c0_i32_0 : i32, i32, i32
  }
  func.func @transform_9(%arg0: i32, %arg1: i32) -> (i32, i32, i32) {
    %c0_i32 = arith.constant 0 : i32
    %c0_i32_0 = arith.constant 0 : i32
    %c0_i32_1 = arith.constant 0 : i32
    return %arg1, %c0_i32, %c0_i32_0 : i32, i32, i32
  }
  func.func @transform_10(%arg0: i32, %arg1: i32) -> (i32, i32, i32) {
    %c0_i32 = arith.constant 0 : i32
    %c0_i32_0 = arith.constant 0 : i32
    %c0_i32_1 = arith.constant 0 : i32
    return %arg1, %c0_i32, %c0_i32_0 : i32, i32, i32
  }
  func.func @transform_11(%arg0: i32, %arg1: i32) -> (i32, i32, i32) {
    %c0_i32 = arith.constant 0 : i32
    %c0_i32_0 = arith.constant 0 : i32
    %c0_i32_1 = arith.constant 0 : i32
    return %arg1, %c0_i32, %c0_i32_0 : i32, i32, i32
  }
  func.func @transform_12(%arg0: i32, %arg1: i32) -> (i32, i32, i32) {
    %c0_i32 = arith.constant 0 : i32
    %c0_i32_0 = arith.constant 0 : i32
    %c0_i32_1 = arith.constant 0 : i32
    return %arg1, %c0_i32, %c0_i32_0 : i32, i32, i32
  }
  func.func @transform_13(%arg0: i32, %arg1: i32) -> (i32, i32, i32, i32) {
    %c0_i32 = arith.constant 0 : i32
    %c0_i32_0 = arith.constant 0 : i32
    %c0_i32_1 = arith.constant 0 : i32
    return %arg1, %arg0, %c0_i32, %c0_i32_0 : i32, i32, i32, i32
  }
  func.func @transform_14(%arg0: i32, %arg1: i32) -> (i32, i32, i32) {
    %c0_i32 = arith.constant 0 : i32
    %c0_i32_0 = arith.constant 0 : i32
    %c0_i32_1 = arith.constant 0 : i32
    return %arg0, %c0_i32, %c0_i32_0 : i32, i32, i32
  }
}

</mosaic_0001>

<bundles_post_ra>
// kernel: clip_transformer_forward.1
= control target key start
LH: loop header
LB: loop body
LE: loop exit
PB: predicated region body
PF: predicated region fallthrough
CT: control target
= control target key end

     0   :  { %s4378_s0 = inlined_call_operand.vmem [shape: f32[2,8,128], index: 0, kind: input, shape index: {}]   ;;  %s4379_s1 = inlined_call_operand.vmem [shape: f32[2,1,128], index: 1, kind: input, shape index: {}]   ;;  %s4380_s2 = inlined_call_operand.vmem [shape: f32[2,1,128], index: 2, kind: input, shape index: {}]   ;;  %s4381_s3 = inlined_call_operand.vmem [shape: bf16[2,128,384], index: 3, kind: input, shape index: {}]   ;;  %s4382_s4 = inlined_call_operand.vmem [shape: f32[2,1,384], index: 4, kind: input, shape index: {}]   ;;  %s4383_s5 = inlined_call_operand.vmem [shape: bf16[2,128,128], index: 5, kind: input, shape index: {}]   ;;  %s4384_s6 = inlined_call_operand.vmem [shape: f32[2,1,128], index: 6, kind: input, shape index: {}]   ;;  %s4385_s7 = inlined_call_operand.vmem [shape: f32[2,1,128], index: 7, kind: input, shape index: {}]   ;;  %s4386_s8 = inlined_call_operand.vmem [shape: f32[2,1,128], index: 8, kind: input, shape index: {}]   ;;  %s4387_s9 = inlined_call_operand.vmem [shape: bf16[2,128,512], index: 9, kind: input, shape index: {}]   ;;  %s4388_s10 = inlined_call_operand.vmem [shape: f32[2,1,512], index: 10, kind: input, shape index: {}]   ;;  %s4389_s11 = inlined_call_operand.vmem [shape: bf16[2,512,128], index: 11, kind: input, shape index: {}]   ;;  %s4390_s12 = inlined_call_operand.vmem [shape: f32[2,1,128], index: 12, kind: input, shape index: {}]   ;;  %s4391_s13 = inlined_call_operand.vmem [shape: f32[2,2,8,128], index: 13, kind: output, shape index: {0}]   ;;  %s4392_s14 = inlined_call_operand.hbm [shape: f32[2,8,128], index: 14, kind: output, shape index: {1}]  }
   0x1   :  { %4396 = sst [smem:[#allocation9_spill]] %s4379_s1 }
   0x2   :  { %4397 = sst [smem:[#allocation10_spill]] %s4380_s2 }
   0x3   :  { %4398 = sst [smem:[#allocation11_spill]] %s4381_s3 }
   0x4   :  { %4399 = sst [smem:[#allocation12_spill]] %s4383_s5 }
   0x5   :  { %4400 = sst [smem:[#allocation13_spill]] %s4392_s14 }
   0x6   :  { %20 = vsyncpa [#allocation4], 0  ;;  %s3814_s29 = smov 0   ;;  %s3816_s30 = smov 0  }
   0x7   :  { %s3818_s15 = smov 0  }
   0x8 LB: > { %4401 = sst [smem:[#allocation6_spill]] %s3724_s30  ;;  %s35_s17 = sadd.s32 1, %s3724_s30  ;;  %s3728_s15 = sphi %s3818_s15, %s26_s15   ;;  %s3724_s30 = sphi %s3816_s30, %s4421_s30   ;;  %s3720_s29 = sphi %s3814_s29, %s4420_s29  }
   0x9   : > { %4402 = sst [smem:[#allocation7_spill]] %s3728_s15  ;;  %p36_p0 = scmp.ge.s32.totalorder %s35_s17, 2 }
   0xa   : > { %p3071_p1 = scmp.ge.s32.totalorder %s3728_s15, 1  ;;  %p537_p2 = scmp.lt.s32.totalorder %s3728_s15, 3 }
   0xb   : > { %s4423_s17 = smov (%p36_p0, %s35_s17), 0 }
   0xc   : > { %4403 = sst [smem:[#allocation8_spill]] %s4423_s17  ;;  %p538_p3 = pnand %p3071_p1, %p537_p2 }
   0xd   : > { %p639_p4 = scmp.lt.s32.totalorder (!%p538_p3), %s3720_s29, 1  ;;  %s4406_s5 = sld [smem:[#allocation12_spill]] (!%p538_p3) }
   0xe   : > { %541 = sbr.rel (%p538_p3) target bundleno = 4114 (0x1012), region = 72  ;;  %s4407_s3 = sld [smem:[#allocation11_spill]] (!%p538_p3) }
   0xf   : > { %p3082_p5 = scmp.ne.s32.totalorder (!%p538_p3), %s3720_s29, 0 }
  0x15   : > { %s3837_s18 = scalar_select %p639_p4, %s3720_s29, 1 }
  0x16   : > { %v701_v0 = vld [vmem:[%s4378_s0] sm:$0xff] (!%p3082_p5)  ;;  %v702_v1 = vld [vmem:[%s4378_s0 + $0x8] sm:$0xff] (!%p3082_p5) }
  0x17   : > { %s3441_s25 = smul.u32 192, %s3837_s18  ;;  %s3207_s26 = sshll.u32 %s3837_s18, 6  ;;  %703 = vst [vmem:[#allocation2] sm:$0xff] (!%p3082_p5), %v701_v0  ;;  %704 = vst [vmem:[#allocation2 + $0x8] sm:$0xff] (!%p3082_p5), %v702_v1 }
  0x18   : > { %s3442_s27 = smul.u32 3, %s3837_s18  ;;  %s3853_s20 = scalar_lea.vmem %s4406_s5, %s3207_s26 }
  0x19   : > { %s3858_s30 = scalar_lea.vmem %s4407_s3, %s3441_s25  ;;  %s3208_s16 = sshll.u32 %s3837_s18, 8 }
  0x1a   : > { %s3867_s15 = scalar_lea.vmem %s4382_s4, %s3442_s27  ;;  %s3881_s3 = scalar_lea.vmem %s4387_s9, %s3208_s16 }
  0x1b   : > { %s3077_s14 = sshll.u32 %s3837_s18, 2  ;;  %s3892_s1 = scalar_lea.vmem %s4389_s11, %s3208_s16 }
  0x1c   : > { %s3887_s24 = scalar_lea.vmem %s4388_s10, %s3077_s14  ;;  %s684_s19 = scalar_lea.vmem %s4390_s12, %s3837_s18 }
  0x1d   : > { %s3210_s5 = sshll.u32 %s3837_s18, 4  ;;  %700 = sbr.rel (%p3082_p5) target bundleno = 36 (0x24), region = 76 }
  0x1e   : > { %s3902_s25 = scalar_lea.vmem %s4391_s13, %s3210_s5 }
  0x24 PF: > { %v705_v2 = vld [vmem:[#allocation2] sm:$0xff]  ;;  %v706_v3 = vld [vmem:[#allocation2 + $0x8] sm:$0xff]  ;;  %v3730_v6 = vmov 0.0   ;;  %v3492_v20 = vld [vmem:[%s3858_s30 + $0x30] ss:$12 sps:$4 sm:$0xff]   ;;  %v3731_v32 = vmov 0   ;;  %v783_v55 = vlaneseq  ;;  %s4412_s16 = scalar_lea.vmem %s4384_s6, %s3837_s18  ;;  %s4414_s23 = scalar_lea.vmem %s4386_s8, %s3837_s18 }
  0x25   : > { %707 = vadd.xlane.f32.xlu0 %v705_v2  ;;  %v3482_v4 = vld [vmem:[%s3858_s30 + $0x4] ss:$12 sps:$4 sm:$0xff]   ;;  %v3484_v5 = vld [vmem:[%s3858_s30] ss:$12 sps:$4 sm:$0xff]   ;;  %3305 = vmatprep.subr.bf16.mxu1 %v3730_v6  ;;  %v3485_v7 = vld [vmem:[%s3858_s30 + $0x8] ss:$12 sps:$4 sm:$0xff]  }
  0x26   : > { %v3486_v8 = vld [vmem:[%s3858_s30 + $0x1c] ss:$12 sps:$4 sm:$0xff]   ;;  %926 = vmatprep.subr.bf16.mxu0 %v3482_v4  ;;  %3306 = vmatpush3.bf16.msra.mxu1 %v3485_v7  ;;  %v3488_v17 = vld [vmem:[%s3858_s30 + $0x18] ss:$12 sps:$4 sm:$0xff]   ;;  %v3489_v18 = vld [vmem:[%s3858_s30 + $0x20] ss:$12 sps:$4 sm:$0xff]  }
  0x27   : > { %927 = vmatpush1.bf16.msra.mxu0 %v3484_v5  ;;  %3307 = vmatprep.subr.bf16.mxu1 %v3730_v6  ;;  %v3490_v19 = vld [vmem:[%s3858_s30 + $0x34] ss:$12 sps:$4 sm:$0xff]   ;;  %v3493_v21 = vld [vmem:[%s3858_s30 + $0x38] ss:$12 sps:$4 sm:$0xff]   ;;  %v3497_v24 = vld [vmem:[%s3858_s30 + $0x50] ss:$12 sps:$4 sm:$0xff]  }
  0x28   : > { %928 = vmatprep.subr.bf16.mxu0 %v3486_v8  ;;  %v3494_v22 = vld [vmem:[%s3858_s30 + $0x4c] ss:$12 sps:$4 sm:$0xff]   ;;  %v3496_v23 = vld [vmem:[%s3858_s30 + $0x48] ss:$12 sps:$4 sm:$0xff]   ;;  %v3498_v25 = vld [vmem:[%s3858_s30 + $0x64] ss:$12 sps:$4 sm:$0xff]   ;;  %958 = vmatprep.mubr.bf16.mxu0 %v3731_v32 }
  0x29   : > { %709 = vadd.xlane.f32.xlu0 %v706_v3  ;;  %v3500_v26 = vld [vmem:[%s3858_s30 + $0x60] ss:$12 sps:$4 sm:$0xff]   ;;  %v3501_v27 = vld [vmem:[%s3858_s30 + $0x68] ss:$12 sps:$4 sm:$0xff]   ;;  %v3504_v29 = vld [vmem:[%s3858_s30 + $0x78] ss:$12 sps:$4 sm:$0xff]  }
  0x2a   : > { %3308 = vmatpush3.bf16.msra.mxu1 %v3489_v18  ;;  %v3502_v28 = vld [vmem:[%s3858_s30 + $0x7c] ss:$12 sps:$4 sm:$0xff]   ;;  %v3505_v30 = vld [vmem:[%s3858_s30 + $0x80] ss:$12 sps:$4 sm:$0xff]   ;;  %vm3732_vm0 = vmmov 0   ;;  %s4408_s28 = sld [smem:[#allocation9_spill]] }
  0x2b   : > { %929 = vmatpush1.bf16.msra.mxu0 %v3488_v17  ;;  %3309 = vmatprep.subr.bf16.mxu1 %v3730_v6  ;;  %v3506_v31 = vld [vmem:[%s3858_s30 + $0x94] ss:$12 sps:$4 sm:$0xff]   ;;  %v3508_v33 = vld [vmem:[%s3858_s30 + $0x90] ss:$12 sps:$4 sm:$0xff]   ;;  %v3509_v34 = vld [vmem:[%s3858_s30 + $0x98] ss:$12 sps:$4 sm:$0xff]  }
  0x2c   : > { %930 = vmatprep.subr.bf16.mxu0 %v3490_v19  ;;  %3321 = vmatprep.mubr.msk.bf16.mxu1 %vm3732_vm0, %v3730_v6  ;;  %v3510_v35 = vld [vmem:[%s3858_s30 + $0xac] ss:$12 sps:$4 sm:$0xff]   ;;  %v3512_v36 = vld [vmem:[%s3858_s30 + $0xa8] ss:$12 sps:$4 sm:$0xff]   ;;  %v3513_v37 = vld [vmem:[%s3858_s30 + $0xb0] ss:$12 sps:$4 sm:$0xff]   ;;  %s4413_s30 = scalar_lea.vmem %s4385_s7, %s3837_s18 }
  0x2d   : > { %s4410_s26 = sld [smem:[#allocation10_spill]]  ;;  %v3972_v56 = vshrl.u32 %v783_v55, 7  ;;  %v781_v58 = vld [vmem:[%s3867_s15] sm:$0x7]  ;;  %vm1016_vm1 = vcmask 261120   ;;  %vm1141_vm2 = vcmask 1043456  }
  0x2e   : > { %3310 = vmatpush3.bf16.msra.mxu1 %v3493_v21  ;;  %vm1111_vm3 = vcmask 64512   ;;  %s3733_s15 = smov 96   ;;  %s3734_s22 = smov 64   ;;  %vm1941_vm4 = vcmask 523264   ;;  %vm1946_vm5 = vcmask 785408  }
  0x2f   : > { %931 = vmatpush1.bf16.msra.mxu0 %v3492_v20  ;;  %3311 = vmatprep.subr.bf16.mxu1 %v3730_v6  ;;  %v789_v57 = vsub.s32 1, %v3972_v56  ;;  %v793_v59 = vsub.s32 2, %v3972_v56  ;;  %v785_v61 = vsub.s32 0, %v3972_v56  ;;  %s3735_s14 = smov 32   ;;  %p3202_p6 = scmp.ne.s32.totalorder %s3720_s29, 1 }
  0x30   : > { %932 = vmatprep.subr.bf16.mxu0 %v3494_v22  ;;  %s4409_s27 = scalar_lea.vmem %s4408_s28, %s3837_s18 }
  0x31   : > { %v3083_v46 = vld [vmem:[%s4409_s27] ss:$0 sm:$0xff]  ;;  %v790_v60 = vrot.slane %v781_v58, %v789_v57  ;;  %v794_v0 = vrot.slane %v781_v58, %v793_v59 }
  0x32   : > { %3312 = vmatpush3.bf16.msra.mxu1 %v3497_v24 }
  0x33   : > { %933 = vmatpush1.bf16.msra.mxu0 %v3496_v23  ;;  %3313 = vmatprep.subr.bf16.mxu1 %v3730_v6  ;;  %s4411_s17 = scalar_lea.vmem %s4410_s26, %s3837_s18 }
  0x34   : > { %934 = vmatprep.subr.bf16.mxu0 %v3498_v25  ;;  %v3084_v50 = vld [vmem:[%s4411_s17] ss:$0 sm:$0xff] }
  0x36   : > { %3314 = vmatpush3.bf16.msra.mxu1 %v3501_v27 }
  0x37   : > { %935 = vmatpush1.bf16.msra.mxu0 %v3500_v26  ;;  %3315 = vmatprep.subr.bf16.mxu1 %v3730_v6 }
  0x38   : > { %936 = vmatprep.subr.bf16.mxu0 %v3502_v28 }
  0x3a   : > { %3316 = vmatpush3.bf16.msra.mxu1 %v3505_v30 }
  0x3b   : > { %937 = vmatpush1.bf16.msra.mxu0 %v3504_v29  ;;  %3317 = vmatprep.subr.bf16.mxu1 %v3730_v6 }
  0x3c   : > { %938 = vmatprep.subr.bf16.mxu0 %v3506_v31 }
  0x3e   : > { %3318 = vmatpush3.bf16.msra.mxu1 %v3509_v34 }
  0x3f   : > { %939 = vmatpush1.bf16.msra.mxu0 %v3508_v33  ;;  %3319 = vmatprep.subr.bf16.mxu1 %v3730_v6 }
  0x40   : > { %940 = vmatprep.subr.bf16.mxu0 %v3510_v35 }
  0x42   : > { %3320 = vmatpush3.bf16.msra.mxu1 %v3513_v37 }
  0x43   : > { %941 = vmatpush1.bf16.msra.mxu0 %v3512_v36  ;;  %3325 = vmatprep.subr.bf16.mxu1 %v3730_v6 }
  0x44   : > { %3349 = vmatprep.subr.bf16.mxu0 %v3730_v6 }
  0xb2   : > { %v708_v9 = vpop.xlane.xlu0 %707 }
  0xb3   : > { %v712_v10 = vmul.f32 0.0078125, %v708_v9 }
  0xb5   : > { %v3917_v11 = vsub.f32 %v705_v2, %v712_v10  ;;  %v786_v10 = vrot.slane %v781_v58, %v785_v61 }
  0xb6   : > { %v710_v12 = vpop.xlane.xlu0 %709 }
  0xb7   : > { %v713_v13 = vmul.f32 0.0078125, %v710_v12  ;;  %v716_v14 = vmul.f32 %v3917_v11, %v3917_v11 }
  0xb9   : > { %v3921_v15 = vsub.f32 %v706_v3, %v713_v13  ;;  %718 = vadd.xlane.f32.xlu1 %v716_v14 }
  0xbb   : > { %v717_v16 = vmul.f32 %v3921_v15, %v3921_v15 }
  0xbd   : > { %720 = vadd.xlane.f32.xlu1 %v717_v16 }
 0x146   : > { %v719_v38 = vpop.xlane.xlu1 %718 }
 0x147   : > { %v722_v39 = vmul.f32 0.0078125, %v719_v38 }
 0x149   : > { %v724_v40 = vadd.f32 1e-05, %v722_v39 }
 0x14a   : > { %v721_v41 = vpop.xlane.xlu1 %720 }
 0x14b   : > { %3602 = vrsqrt.f32 %v724_v40  ;;  %v723_v42 = vmul.f32 0.0078125, %v721_v41 }
 0x14d   : > { %v725_v43 = vadd.f32 1e-05, %v723_v42 }
 0x14f   : > { %3604 = vrsqrt.f32 %v725_v43 }
 0x155   : > { %v3603_v44 = vpop.eup %3602 }
 0x156   : > { %v728_v45 = vmul.f32 %v3603_v44, %v3917_v11 }
 0x158   : > { %v737_v49 = vmul.f32 %v3083_v46, %v728_v45 }
 0x159   : > { %v3605_v47 = vpop.eup %3604 }
 0x15a   : > { %v729_v48 = vmul.f32 %v3605_v47, %v3921_v15  ;;  %v746_v52 = vadd.f32 %v3084_v50, %v737_v49 }
 0x15c   : > { %v738_v51 = vmul.f32 %v3083_v46, %v729_v48 }
 0x15e   : > { %v747_v53 = vadd.f32 %v3084_v50, %v738_v51 }
 0x160   : > { %v748_v54 = vpack.c.bf16 %v747_v53, %v746_v52 }
 0x162   : > { %959 = vmatmul.mubr.bf16.vlgmr.msra.gmra.mrb[0].mxu0 %v748_v54  ;;  %3322 = vmatmul.mubr.bf16.vlgmr.msra.gmra.mrb[0].mxu1 %v748_v54 }
 0x163   : > { %3327 = vmatprep.mubr.msk.bf16.mxu1 %vm3732_vm0, %v3730_v6  ;;  %3351 = vmatprep.mubr.msk.bf16.mxu0 %vm3732_vm0, %v3730_v6 }
 0x235   : > { %v960_v62 = vpop.f32.mrb[0].mxu0  ;;  %v1003_v63 = vpop.f32.mrb[0].mxu1 }
 0x236   : > { %v962_v1 = vpop.f32.mrb[1].mxu0  ;;  %v3323_v2 = vpop.f32.mrb[1].mxu1  ;;  %v961_v14 = vadd.f32 %v960_v62, %v786_v10  ;;  %v1004_v17 = vadd.f32 %v1003_v63, %v794_v0 }
 0x237   : > { %v963_v3 = vadd.f32 %v962_v1, %v790_v60  ;;  %v964_v4 = vpop.f32.mrb[2].mxu0  ;;  %v1006_v5 = vpop.f32.mrb[2].mxu1 }
 0x238   : > { %v3982_v7 = vadd.f32 %v1006_v5, %v794_v0  ;;  %v966_v8 = vpop.f32.mrb[3].mxu0  ;;  %v3324_v9 = vpop.f32.mrb[3].mxu1  ;;  %v3993_v16 = vpack.c.bf16 %v961_v14, %v961_v14  ;;  %v965_v19 = vadd.f32 %v964_v4, %v786_v10  ;;  %v4002_v20 = vpack.c.bf16 %v1004_v17, %v1004_v17 }
 0x239   : > { %v3986_v11 = vpack.c.bf16 %v963_v3, %v963_v3  ;;  %v967_v12 = vadd.f32 %v966_v8, %v790_v60 }
 0x23a   : > { %v4004_v21 = vpack.c.bf16 %v965_v19, %v965_v19  ;;  %v1143_v22 = vsel %vm1141_vm2, %v4002_v20, 0  ;;  %v4029_v52 = vpack.c.bf16 %v3982_v7, %v3982_v7 }
 0x23b   : > { %v1021_v13 = vsel %vm1016_vm1, %v3986_v11, 0  ;;  %v3991_v15 = vpack.c.bf16 %v967_v12, %v967_v12 }
 0x23c   : > { %3326 = vmatpush3.bf16.xpose.msra.mxu1 %v1021_v13  ;;  %v1189_v58 = vsel %vm1141_vm2, %v4029_v52, 0 }
 0x23d   : > { %3331 = vmatprep.subr.bf16.mxu1 %v3730_v6  ;;  %v1067_v18 = vsel %vm1016_vm1, %v3991_v15, 0 }
 0x243   : > { %3328 = vmatmul.mubr.msk.bf16.vlgmr.msra.gmra.mrb[4].mxu1 %vm1016_vm1, %v3993_v16 }
 0x244   : > { %3332 = vmatpush3.bf16.xpose.msra.mxu1 %v1067_v18  ;;  %3333 = vmatprep.mubr.msk.bf16.mxu1 %vm3732_vm0, %v3730_v6 }
 0x245   : > { %3337 = vmatprep.subr.bf16.mxu1 %v3730_v6 }
 0x24b   : > { %3334 = vmatmul.mubr.msk.bf16.vlgmr.msra.gmra.mrb[8].mxu1 %vm1016_vm1, %v4004_v21 }
 0x24c   : > { %3338 = vmatpush3.bf16.msra.mxu1 %v1143_v22  ;;  %3339 = vmatprep.mubr.msk.bf16.mxu1 %vm3732_vm0, %v3730_v6 }
 0x24d   : > { %3343 = vmatprep.subr.bf16.mxu1 %v3730_v6 }
 0x316   : > { %v1057_v23 = vpop.f32.mrb[4].mxu1 }
 0x317   : > { %v1109_v24 = vmul.f32 0.17677669, %v1057_v23  ;;  %v3329_v25 = vpop.f32.mrb[5].mxu1 }
 0x318   : > { %v1060_v26 = vpop.f32.mrb[6].mxu1 }
 0x319   : > { %v3330_v27 = vpop.f32.mrb[7].mxu1  ;;  %v1112_v28 = vsel %vm1111_vm3, %v1109_v24, -inf }
 0x31a   : > { %1113 = vmax.xlane.f32.xlu0 %v1112_v28 }
 0x31e   : > { %v1103_v29 = vpop.f32.mrb[8].mxu1 }
 0x31f   : > { %v1110_v30 = vmul.f32 0.17677669, %v1103_v29  ;;  %v3335_v31 = vpop.f32.mrb[9].mxu1 }
 0x320   : > { %v1106_v33 = vpop.f32.mrb[10].mxu1 }
 0x321   : > { %v3336_v34 = vpop.f32.mrb[11].mxu1  ;;  %v1115_v35 = vsel %vm1111_vm3, %v1110_v30, -inf }
 0x322   : > { %1116 = vmax.xlane.f32.xlu1 %v1115_v35 }
 0x333   : > { %1289 = vrot.lane.b32.xlu1 %v3991_v15, %s3733_s15 }
 0x3a7   : > { %v1114_v36 = vpop.xlane.xlu0 %1113 }
 0x3a8   : > { %v1118_v37 = vsub.f32 %v1109_v24, %v1114_v36 }
 0x3aa   : > { %v1120_v38 = vmul.f32 1.442695, %v1118_v37 }
 0x3ac   : > { %3606 = vpow2.f32 %v1120_v38 }
 0x3af   : > { %v1117_v39 = vpop.xlane.xlu1 %1116 }
 0x3b0   : > { %v1119_v40 = vsub.f32 %v1110_v30, %v1117_v39 }
 0x3b2   : > { %v1122_v41 = vmul.f32 1.442695, %v1119_v40 }
 0x3b3   : > { %v1290_v47 = vpop.permute.xlu1 %1289 }
 0x3b4   : > { %3608 = vpow2.f32 %v1122_v41  ;;  %v1295_v0 = vsel %vm1016_vm1, %v1290_v47, 0 }
 0x3b6   : > { %v3607_v42 = vpop.eup %3606 }
 0x3b7   : > { %v1124_v43 = vsel %vm1111_vm3, %v3607_v42, 0.0 }
 0x3b8   : > { %1125 = vadd.xlane.f32.xlu0 %v1124_v43 }
 0x3be   : > { %v3609_v44 = vpop.eup %3608 }
 0x3bf   : > { %v1127_v45 = vsel %vm1111_vm3, %v3609_v44, 0.0 }
 0x3c0   : > { %1128 = vadd.xlane.f32.xlu1 %v1127_v45 }
 0x3ce   : > { %1237 = vrot.lane.b32.xlu0 %v3986_v11, %s3733_s15 }
 0x3d1   : > { %1234 = vrot.lane.b32.xlu1 %v3993_v16, %s3733_s15 }
 0x3d5   : > { %1286 = vrot.lane.b32.xlu1 %v4004_v21, %s3733_s15 }
 0x445   : > { %v1126_v46 = vpop.xlane.xlu0 %1125 }
 0x446   : > { %3610 = vrcp.f32 %v1126_v46 }
 0x449   : > { %v1238_v48 = vpop.permute.xlu0 %1237 }
 0x44a   : > { %v1243_v49 = vsel %vm1016_vm1, %v1238_v48, 0 }
 0x44b   : > { %3350 = vmatpush3.bf16.xpose.msra.mxu0 %v1243_v49 }
 0x44c   : > { %3361 = vmatprep.subr.bf16.mxu0 %v3730_v6 }
 0x44d   : > { %v1129_v50 = vpop.xlane.xlu1 %1128 }
 0x44e   : > { %3612 = vrcp.f32 %v1129_v50 }
 0x450   : > { %v3611_v51 = vpop.eup %3610 }
 0x451   : > { %v4031_v53 = vmul.f32 %v3611_v51, %v3607_v42  ;;  %v1235_v54 = vpop.permute.xlu1 %1234 }
 0x452   : > { %3352 = vmatmul.mubr.msk.bf16.vlgmr.msra.gmra.mrb[4].mxu0 %vm1016_vm1, %v1235_v54 }
 0x453   : > { %v1136_v55 = vpack.c.bf16 %v4031_v53, %v4031_v53  ;;  %3363 = vmatprep.mubr.msk.bf16.mxu0 %vm3732_vm0, %v3730_v6 }
 0x455   : > { %3340 = vmatmul.mubr.msk.bf16.vlgmr.msra.gmra.mrb[12].mxu1 %vm1111_vm3, %v1136_v55  ;;  %v1287_v1 = vpop.permute.xlu1 %1286 }
 0x456   : > { %3344 = vmatpush3.bf16.msra.mxu1 %v1189_v58  ;;  %3345 = vmatprep.mubr.msk.bf16.mxu1 %vm3732_vm0, %v3730_v6 }
 0x457   : > { %3355 = vmatprep.subr.bf16.mxu1 %v3730_v6 }
 0x458   : > { %v3613_v60 = vpop.eup %3612 }
 0x459   : > { %v4044_v62 = vmul.f32 %v3613_v60, %v3609_v44 }
 0x45b   : > { %v1137_v63 = vpack.c.bf16 %v4044_v62, %v4044_v62 }
 0x45d   : > { %3346 = vmatmul.mubr.msk.bf16.vlgmr.msra.gmra.mrb[16].mxu1 %vm1111_vm3, %v1137_v63 }
 0x45e   : > { %3357 = vmatprep.mubr.msk.bf16.mxu1 %vm3732_vm0, %v3730_v6 }
 0x45f   : > { %3356 = vmatpush3.bf16.xpose.msra.mxu1 %v1295_v0 }
 0x460   : > { %3367 = vmatprep.subr.bf16.mxu1 %v3730_v6 }
 0x466   : > { %3358 = vmatmul.mubr.msk.bf16.vlgmr.msra.gmra.mrb[20].mxu1 %vm1016_vm1, %v1287_v1 }
 0x467   : > { %3369 = vmatprep.mubr.msk.bf16.mxu1 %vm3732_vm0, %v3730_v6 }
 0x525   : > { %v1279_v2 = vpop.f32.mrb[4].mxu0 }
 0x526   : > { %v1337_v3 = vmul.f32 0.17677669, %v1279_v2  ;;  %v3353_v4 = vpop.f32.mrb[5].mxu0 }
 0x527   : > { %v1282_v5 = vpop.f32.mrb[6].mxu0 }
 0x528   : > { %v4056_v7 = vpop.f32.mrb[12].mxu1  ;;  %v3354_v8 = vpop.f32.mrb[7].mxu0  ;;  %v1339_v9 = vsel %vm1111_vm3, %v1337_v3, -inf }
 0x529   : > { %1340 = vmax.xlane.f32.xlu0 %v1339_v9  ;;  %v3341_v10 = vpop.f32.mrb[13].mxu1 }
 0x52a   : > { %v1182_v12 = vpop.f32.mrb[14].mxu1 }
 0x52b   : > { %v3342_v13 = vpop.f32.mrb[15].mxu1 }
 0x530   : > { %v4059_v14 = vpop.f32.mrb[16].mxu1 }
 0x531   : > { %v3347_v17 = vpop.f32.mrb[17].mxu1 }
 0x532   : > { %v1228_v18 = vpop.f32.mrb[18].mxu1 }
 0x533   : > { %v3348_v19 = vpop.f32.mrb[19].mxu1 }
 0x539   : > { %v1331_v22 = vpop.f32.mrb[20].mxu1 }
 0x53a   : > { %v1338_v23 = vmul.f32 0.17677669, %v1331_v22  ;;  %v3359_v24 = vpop.f32.mrb[21].mxu1 }
 0x53b   : > { %v1334_v25 = vpop.f32.mrb[22].mxu1 }
 0x53c   : > { %v3360_v26 = vpop.f32.mrb[23].mxu1  ;;  %v1342_v27 = vsel %vm1111_vm3, %v1338_v23, -inf }
 0x53d   : > { %1343 = vmax.xlane.f32.xlu1 %v1342_v27 }
 0x54e   : > { %1415 = vrot.lane.b32.xlu1 %v4029_v52, %s3733_s15 }
 0x552   : > { %1467 = vrot.lane.b32.xlu1 %v3986_v11, %s3734_s22 }
 0x556   : > { %1517 = vrot.lane.b32.xlu1 %v3991_v15, %s3734_s22 }
 0x55a   : > { %1515 = vrot.lane.b32.xlu1 %v4004_v21, %s3734_s22 }
 0x5b6   : > { %v1341_v28 = vpop.xlane.xlu0 %1340 }
 0x5b7   : > { %v1345_v29 = vsub.f32 %v1337_v3, %v1341_v28 }
 0x5b9   : > { %v1347_v30 = vmul.f32 1.442695, %v1345_v29 }
 0x5bb   : > { %3614 = vpow2.f32 %v1347_v30 }
 0x5c5   : > { %v3615_v31 = vpop.eup %3614 }
 0x5c6   : > { %v1351_v33 = vsel %vm1111_vm3, %v3615_v31, 0.0 }
 0x5c7   : > { %1352 = vadd.xlane.f32.xlu0 %v1351_v33 }
 0x5ca   : > { %v1344_v34 = vpop.xlane.xlu1 %1343 }
 0x5cb   : > { %v1346_v35 = vsub.f32 %v1338_v23, %v1344_v34 }
 0x5cd   : > { %v1349_v36 = vmul.f32 1.442695, %v1346_v35 }
 0x5ce   : > { %v1416_v37 = vpop.permute.xlu1 %1415 }
 0x5cf   : > { %3616 = vpow2.f32 %v1349_v36  ;;  %v1421_v38 = vsel %vm1141_vm2, %v1416_v37, 0 }
 0x5d0   : > { %3368 = vmatpush3.bf16.msra.mxu1 %v1421_v38 }
 0x5d1   : > { %3379 = vmatprep.subr.bf16.mxu1 %v3730_v6 }
 0x5d2   : > { %v1468_v47 = vpop.permute.xlu1 %1467 }
 0x5d3   : > { %v1473_v54 = vsel %vm1016_vm1, %v1468_v47, 0 }
 0x5d6   : > { %v1518_v51 = vpop.permute.xlu1 %1517 }
 0x5d7   : > { %v1523_v58 = vsel %vm1016_vm1, %v1518_v51, 0 }
 0x5d9   : > { %v3617_v39 = vpop.eup %3616 }
 0x5da   : > { %v1354_v40 = vsel %vm1111_vm3, %v3617_v39, 0.0  ;;  %v1516_v63 = vpop.permute.xlu1 %1515 }
 0x5db   : > { %1355 = vadd.xlane.f32.xlu0 %v1354_v40 }
 0x5f1   : > { %1366 = vrot.lane.b32.xlu0 %v4002_v20, %s3733_s15 }
 0x5f5   : > { %1465 = vrot.lane.b32.xlu0 %v3993_v16, %s3734_s22 }
 0x654   : > { %v1353_v41 = vpop.xlane.xlu0 %1352 }
 0x655   : > { %3618 = vrcp.f32 %v1353_v41 }
 0x65f   : > { %v3619_v42 = vpop.eup %3618 }
 0x660   : > { %v4078_v44 = vmul.f32 %v3619_v42, %v3615_v31 }
 0x662   : > { %v1363_v48 = vpack.c.bf16 %v4078_v44, %v4078_v44 }
 0x668   : > { %v1356_v43 = vpop.xlane.xlu0 %1355 }
 0x669   : > { %3620 = vrcp.f32 %v1356_v43 }
 0x66c   : > { %v1367_v45 = vpop.permute.xlu0 %1366 }
 0x66d   : > { %v1372_v46 = vsel %vm1141_vm2, %v1367_v45, 0  ;;  %v1361_v45 = vadd.f32 %v4078_v44, %v4031_v53 }
 0x66e   : > { %3362 = vmatpush3.bf16.msra.mxu0 %v1372_v46 }
 0x66f   : > { %3373 = vmatprep.subr.bf16.mxu0 %v3730_v6 }
 0x670   : > { %v1466_v60 = vpop.permute.xlu0 %1465 }
 0x671   : > { %3364 = vmatmul.mubr.msk.bf16.vlgmr.msra.gmra.mrb[8].mxu0 %vm1111_vm3, %v1363_v48 }
 0x672   : > { %3375 = vmatprep.mubr.msk.bf16.mxu0 %vm3732_vm0, %v3730_v6 }
 0x673   : > { %v3621_v49 = vpop.eup %3620 }
 0x674   : > { %v4087_v50 = vmul.f32 %v3621_v49, %v3617_v39 }
 0x676   : > { %v1364_v55 = vpack.c.bf16 %v4087_v50, %v4087_v50  ;;  %v1362_v49 = vadd.f32 %v4087_v50, %v4044_v62 }
 0x677   : > { %3374 = vmatpush3.bf16.xpose.msra.mxu0 %v1473_v54 }
 0x678   : > { %3370 = vmatmul.mubr.msk.bf16.vlgmr.msra.gmra.mrb[24].mxu1 %vm1111_vm3, %v1364_v55  ;;  %3385 = vmatprep.subr.bf16.mxu0 %v3730_v6 }
 0x679   : > { %3380 = vmatpush3.bf16.xpose.msra.mxu1 %v1523_v58  ;;  %3381 = vmatprep.mubr.msk.bf16.mxu1 %vm3732_vm0, %v3730_v6 }
 0x67a   : > { %3391 = vmatprep.subr.bf16.mxu1 %v3730_v6 }
 0x67e   : > { %3376 = vmatmul.mubr.msk.bf16.vlgmr.msra.gmra.mrb[12].mxu0 %vm1016_vm1, %v1466_v60 }
 0x67f   : > { %3387 = vmatprep.mubr.msk.bf16.mxu0 %vm3732_vm0, %v3730_v6 }
 0x680   : > { %3382 = vmatmul.mubr.msk.bf16.vlgmr.msra.gmra.mrb[28].mxu1 %vm1016_vm1, %v1516_v63 }
 0x681   : > { %3393 = vmatprep.mubr.msk.bf16.mxu1 %vm3732_vm0, %v3730_v6 }
 0x744   : > { %v4104_v0 = vpop.f32.mrb[8].mxu0 }
 0x745   : > { %v3365_v1 = vpop.f32.mrb[9].mxu0 }
 0x746   : > { %v1411_v2 = vpop.f32.mrb[10].mxu0 }
 0x747   : > { %v3366_v3 = vpop.f32.mrb[11].mxu0 }
 0x74b   : > { %v4106_v4 = vpop.f32.mrb[24].mxu1 }
 0x74c   : > { %v3371_v5 = vpop.f32.mrb[25].mxu1 }
 0x74d   : > { %v1460_v8 = vpop.f32.mrb[26].mxu1 }
 0x74e   : > { %v3372_v9 = vpop.f32.mrb[27].mxu1 }
 0x751   : > { %v1509_v10 = vpop.f32.mrb[12].mxu0 }
 0x752   : > { %v1565_v12 = vmul.f32 0.17677669, %v1509_v10  ;;  %v3377_v13 = vpop.f32.mrb[13].mxu0 }
 0x753   : > { %v1512_v17 = vpop.f32.mrb[14].mxu0  ;;  %v1559_v18 = vpop.f32.mrb[28].mxu1 }
 0x754   : > { %v1566_v19 = vmul.f32 0.17677669, %v1559_v18  ;;  %v3378_v22 = vpop.f32.mrb[15].mxu0  ;;  %v3383_v23 = vpop.f32.mrb[29].mxu1  ;;  %v1567_v24 = vsel %vm1111_vm3, %v1565_v12, -inf }
 0x755   : > { %1568 = vmax.xlane.f32.xlu0 %v1567_v24  ;;  %v1562_v25 = vpop.f32.mrb[30].mxu1 }
 0x756   : > { %v3384_v26 = vpop.f32.mrb[31].mxu1  ;;  %v1570_v27 = vsel %vm1111_vm3, %v1566_v19, -inf }
 0x757   : > { %1571 = vmax.xlane.f32.xlu1 %v1570_v27 }
 0x768   : > { %1641 = vrot.lane.b32.xlu1 %v4029_v52, %s3734_s22 }
 0x76c   : > { %1693 = vrot.lane.b32.xlu1 %v3986_v11, %s3735_s14 }
 0x770   : > { %1743 = vrot.lane.b32.xlu1 %v3991_v15, %s3735_s14 }
 0x774   : > { %1741 = vrot.lane.b32.xlu1 %v4004_v21, %s3735_s14 }
 0x7e2   : > { %v1569_v28 = vpop.xlane.xlu0 %1568 }
 0x7e3   : > { %v1573_v29 = vsub.f32 %v1565_v12, %v1569_v28  ;;  %v1463_v28 = vpack.c.bf16 %v4104_v0, %v4104_v0 }
 0x7e4   : > { %v1572_v30 = vpop.xlane.xlu1 %1571 }
 0x7e5   : > { %v1575_v31 = vmul.f32 1.442695, %v1573_v29  ;;  %v1574_v33 = vsub.f32 %v1566_v19, %v1572_v30  ;;  %v1464_v29 = vpack.c.bf16 %v4106_v4, %v4106_v4 }
 0x7e7   : > { %3622 = vpow2.f32 %v1575_v31  ;;  %v1577_v34 = vmul.f32 1.442695, %v1574_v33 }
 0x7e8   : > { %v1642_v35 = vpop.permute.xlu1 %1641 }
 0x7e9   : > { %3624 = vpow2.f32 %v1577_v34  ;;  %v1647_v36 = vsel %vm1141_vm2, %v1642_v35, 0 }
 0x7ea   : > { %3392 = vmatpush3.bf16.msra.mxu1 %v1647_v36 }
 0x7eb   : > { %3403 = vmatprep.subr.bf16.mxu1 %v3730_v6 }
 0x7ec   : > { %v1694_v43 = vpop.permute.xlu1 %1693 }
 0x7ed   : > { %v1699_v55 = vsel %vm1016_vm1, %v1694_v43, 0 }
 0x7f0   : > { %v1744_v54 = vpop.permute.xlu1 %1743 }
 0x7f1   : > { %v3623_v11 = vpop.eup %3622  ;;  %v1749_v44 = vsel %vm1016_vm1, %v1744_v54, 0  ;;  %v3515_v54 = vld [vmem:[%s3853_s20 + $0x8] sm:$0xff]  }
 0x7f2   : > { %v1579_v15 = vsel %vm1111_vm3, %v3623_v11, 0.0 }
 0x7f3   : > { %v3625_v37 = vpop.eup %3624  ;;  %1580 = vadd.xlane.f32.xlu0 %v1579_v15 }
 0x7f4   : > { %v1582_v21 = vsel %vm1111_vm3, %v3625_v37, 0.0  ;;  %v1742_v50 = vpop.permute.xlu1 %1741 }
 0x7f7   : > { %1583 = vadd.xlane.f32.xlu0 %v1582_v21 }
 0x80d   : > { %1593 = vrot.lane.b32.xlu0 %v4002_v20, %s3734_s22 }
 0x811   : > { %1691 = vrot.lane.b32.xlu0 %v3993_v16, %s3735_s14 }
 0x880   : > { %v1581_v38 = vpop.xlane.xlu0 %1580 }
 0x881   : > { %3626 = vrcp.f32 %v1581_v38 }
 0x884   : > { %v1584_v39 = vpop.xlane.xlu0 %1583 }
 0x885   : > { %3628 = vrcp.f32 %v1584_v39 }
 0x888   : > { %v1594_v40 = vpop.permute.xlu0 %1593 }
 0x889   : > { %v1599_v41 = vsel %vm1141_vm2, %v1594_v40, 0 }
 0x88a   : > { %3386 = vmatpush3.bf16.msra.mxu0 %v1599_v41 }
 0x88b   : > { %v3627_v42 = vpop.eup %3626  ;;  %3397 = vmatprep.subr.bf16.mxu0 %v3730_v6 }
 0x88c   : > { %v1587_v46 = vmul.f32 %v3627_v42, %v3623_v11  ;;  %v1692_v62 = vpop.permute.xlu0 %1691 }
 0x88e   : > { %v4130_v47 = vadd.f32 %v1587_v46, %v1361_v45  ;;  %v1591_v48 = vpack.c.bf16 %v1587_v46, %v1587_v46 }
 0x88f   : > { %v3629_v16 = vpop.eup %3628 }
 0x890   : > { %v1588_v51 = vmul.f32 %v3629_v16, %v3625_v37  ;;  %3388 = vmatmul.mubr.msk.bf16.vlgmr.msra.gmra.mrb[16].mxu0 %vm1111_vm3, %v1591_v48 }
 0x891   : > { %3399 = vmatprep.mubr.msk.bf16.mxu0 %vm3732_vm0, %v3730_v6 }
 0x892   : > { %v4138_v58 = vadd.f32 %v1588_v51, %v1362_v49  ;;  %v1592_v53 = vpack.c.bf16 %v1588_v51, %v1588_v51 }
 0x893   : > { %3398 = vmatpush3.bf16.xpose.msra.mxu0 %v1699_v55  ;;  %v3516_v55 = vld [vmem:[%s3853_s20 + $0x10] sm:$0xff]  }
 0x894   : > { %3394 = vmatmul.mubr.msk.bf16.vlgmr.msra.gmra.mrb[32].mxu1 %vm1111_vm3, %v1592_v53  ;;  %3409 = vmatprep.subr.bf16.mxu0 %v3730_v6  ;;  %v3518_v53 = vld [vmem:[%s3853_s20 + $0x20] sm:$0xff]  }
 0x895   : > { %3404 = vmatpush3.bf16.xpose.msra.mxu1 %v1749_v44  ;;  %3405 = vmatprep.mubr.msk.bf16.mxu1 %vm3732_vm0, %v3730_v6  ;;  %v3519_v44 = vld [vmem:[%s3853_s20 + $0x28] sm:$0xff]  }
 0x896   : > { %3415 = vmatprep.subr.bf16.mxu1 %v3730_v6 }
 0x89a   : > { %3400 = vmatmul.mubr.msk.bf16.vlgmr.msra.gmra.mrb[20].mxu0 %vm1016_vm1, %v1692_v62  ;;  %v3520_v62 = vld [vmem:[%s3853_s20 + $0x30] sm:$0xff]  }
 0x89b   : > { %3411 = vmatprep.mubr.msk.bf16.mxu0 %vm3732_vm0, %v3730_v6 }
 0x89c   : > { %3406 = vmatmul.mubr.msk.bf16.vlgmr.msra.gmra.mrb[36].mxu1 %vm1016_vm1, %v1742_v50  ;;  %v3521_v50 = vld [vmem:[%s3853_s20 + $0x38] sm:$0xff]  }
 0x89d   : > { %3417 = vmatprep.mubr.msk.bf16.mxu1 %vm3732_vm0, %v3730_v6 }
 0x963   : > { %v1635_v60 = vpop.f32.mrb[16].mxu0 }
 0x964   : > { %v3389_v63 = vpop.f32.mrb[17].mxu0  ;;  %v1689_v38 = vpack.c.bf16 %v1635_v60, %v1635_v60 }
 0x965   : > { %v1638_v1 = vpop.f32.mrb[18].mxu0 }
 0x966   : > { %v3390_v2 = vpop.f32.mrb[19].mxu0 }
 0x967   : > { %v1683_v3 = vpop.f32.mrb[32].mxu1 }
 0x968   : > { %v3395_v5 = vpop.f32.mrb[33].mxu1  ;;  %v1690_v30 = vpack.c.bf16 %v1683_v3, %v1683_v3 }
 0x969   : > { %v1686_v8 = vpop.f32.mrb[34].mxu1 }
 0x96a   : > { %v3396_v9 = vpop.f32.mrb[35].mxu1 }
 0x96d   : > { %v1735_v10 = vpop.f32.mrb[20].mxu0 }
 0x96e   : > { %v1791_v12 = vmul.f32 0.17677669, %v1735_v10  ;;  %v3401_v13 = vpop.f32.mrb[21].mxu0 }
 0x96f   : > { %v1738_v17 = vpop.f32.mrb[22].mxu0  ;;  %v1785_v18 = vpop.f32.mrb[36].mxu1 }
 0x970   : > { %v1792_v19 = vmul.f32 0.17677669, %v1785_v18  ;;  %v3402_v22 = vpop.f32.mrb[23].mxu0  ;;  %v3407_v23 = vpop.f32.mrb[37].mxu1  ;;  %v1793_v24 = vsel %vm1111_vm3, %v1791_v12, -inf }
 0x971   : > { %1794 = vmax.xlane.f32.xlu0 %v1793_v24  ;;  %v1788_v25 = vpop.f32.mrb[38].mxu1  ;;  %v1232_v22 = vpack.c.bf16 %v4059_v14, %v4059_v14 }
 0x972   : > { %v3408_v26 = vpop.f32.mrb[39].mxu1  ;;  %v1796_v27 = vsel %vm1111_vm3, %v1792_v19, -inf }
 0x973   : > { %1797 = vmax.xlane.f32.xlu1 %v1796_v27 }
 0x984   : > { %1867 = vrot.lane.b32.xlu1 %v4029_v52, %s3735_s14 }
 0x988   : > { %1919 = vrot.lane.b32.xlu1 %v1463_v28, %s3735_s14 }
 0x98c   : > { %1921 = vrot.lane.b32.xlu1 %v1464_v29, %s3735_s14 }
 0x990   : > { %1927 = vrot.lane.b32.xlu1 %v1690_v30, %s3734_s22 }
 0x9fe   : > { %v1795_v31 = vpop.xlane.xlu0 %1794 }
 0x9ff   : > { %v1799_v33 = vsub.f32 %v1791_v12, %v1795_v31 }
 0xa00   : > { %v1798_v34 = vpop.xlane.xlu1 %1797 }
 0xa01   : > { %v1801_v35 = vmul.f32 1.442695, %v1799_v33  ;;  %v1800_v36 = vsub.f32 %v1792_v19, %v1798_v34  ;;  %v1231_v19 = vpack.c.bf16 %v4056_v7, %v4056_v7  ;;  %v3125_v7 = vld [vmem:[%s4412_s16] ss:$0 sm:$0xff] }
 0xa03   : > { %3630 = vpow2.f32 %v1801_v35  ;;  %v1803_v52 = vmul.f32 1.442695, %v1800_v36  ;;  %v3674_v36 = vld [vmem:[#allocation2] sm:$0xff] }
 0xa04   : > { %v1868_v11 = vpop.permute.xlu1 %1867 }
 0xa05   : > { %3632 = vpow2.f32 %v1803_v52  ;;  %v1873_v0 = vsel %vm1141_vm2, %v1868_v11, 0 }
 0xa06   : > { %3416 = vmatpush3.bf16.msra.mxu1 %v1873_v0 }
 0xa08   : > { %v1920_v13 = vpop.permute.xlu1 %1919 }
 0xa09   : > { %v1937_v24 = vsel %vm1016_vm1, %v1231_v19, %v1920_v13  ;;  %v3560_v13 = vld [vmem:[%s3881_s3 + $0xc4] ss:$16 sps:$4 sm:$0xff]  }
 0xa0a   : > { %v3566_v19 = vld [vmem:[%s3881_s3 + $0xe4] ss:$16 sps:$4 sm:$0xff]  }
 0xa0c   : > { %v1922_v17 = vpop.permute.xlu1 %1921 }
 0xa0d   : > { %v3631_v15 = vpop.eup %3630  ;;  %v1940_v25 = vsel %vm1016_vm1, %v1232_v22, %v1922_v17  ;;  %v3563_v17 = vld [vmem:[%s3881_s3 + $0xcc] ss:$16 sps:$4 sm:$0xff]  }
 0xa0e   : > { %v1805_v4 = vsel %vm1111_vm3, %v3631_v15, 0.0  ;;  %v3569_v22 = vld [vmem:[%s3881_s3 + $0xec] ss:$16 sps:$4 sm:$0xff]  }
 0xa0f   : > { %v3633_v37 = vpop.eup %3632  ;;  %1806 = vadd.xlane.f32.xlu0 %v1805_v4  ;;  %v3522_v4 = vld [vmem:[%s3881_s3] ss:$16 sps:$4 sm:$0xff]  }
 0xa10   : > { %v1808_v21 = vsel %vm1111_vm3, %v3633_v37, 0.0 }
 0xa13   : > { %1809 = vadd.xlane.f32.xlu0 %v1808_v21  ;;  %v3525_v21 = vld [vmem:[%s3881_s3 + $0x8] ss:$16 sps:$4 sm:$0xff]  }
 0xa29   : > { %1819 = vrot.lane.b32.xlu0 %v4002_v20, %s3735_s14 }
 0xa2d   : > { %1925 = vrot.lane.b32.xlu0 %v1689_v38, %s3734_s22  ;;  %v3527_v38 = vld [vmem:[%s3881_s3 + $0xc] ss:$16 sps:$4 sm:$0xff]  }
 0xa9c   : > { %v1807_v39 = vpop.xlane.xlu0 %1806 }
 0xa9d   : > { %3634 = vrcp.f32 %v1807_v39  ;;  %v3530_v39 = vld [vmem:[%s3881_s3 + $0x24] ss:$16 sps:$4 sm:$0xff]  }
 0xaa0   : > { %v1810_v40 = vpop.xlane.xlu0 %1809 }
 0xaa1   : > { %3636 = vrcp.f32 %v1810_v40  ;;  %v3533_v40 = vld [vmem:[%s3881_s3 + $0x2c] ss:$16 sps:$4 sm:$0xff]  }
 0xaa4   : > { %v1820_v41 = vpop.permute.xlu0 %1819 }
 0xaa5   : > { %v1825_v42 = vsel %vm1141_vm2, %v1820_v41, 0  ;;  %v3528_v41 = vld [vmem:[%s3881_s3 + $0x20] ss:$16 sps:$4 sm:$0xff]  }
 0xaa6   : > { %3410 = vmatpush3.bf16.msra.mxu0 %v1825_v42  ;;  %v3531_v42 = vld [vmem:[%s3881_s3 + $0x28] ss:$16 sps:$4 sm:$0xff]  }
 0xaa7   : > { %v3635_v43 = vpop.eup %3634  ;;  %3421 = vmatprep.subr.bf16.mxu0 %v3730_v6 }
 0xaa8   : > { %v1813_v45 = vmul.f32 %v3635_v43, %v3631_v15  ;;  %v1926_v18 = vpop.permute.xlu0 %1925 }
 0xaa9   : > { %v1943_v27 = vsel %vm1941_vm4, %v1937_v24, %v1926_v18  ;;  %v3558_v18 = vld [vmem:[%s3881_s3 + $0xc0] ss:$16 sps:$4 sm:$0xff]   ;;  %v3567_v24 = vld [vmem:[%s3881_s3 + $0xe8] ss:$16 sps:$4 sm:$0xff]  }
 0xaaa   : > { %v4172_v20 = vadd.f32 %v1813_v45, %v4130_v47  ;;  %v1817_v46 = vpack.c.bf16 %v1813_v45, %v1813_v45  ;;  %v3514_v47 = vld [vmem:[%s3853_s20] sm:$0xff]  }
 0xaab   : > { %v3637_v48 = vpop.eup %3636 }
 0xaac   : > { %v1814_v16 = vmul.f32 %v3637_v48, %v3633_v37  ;;  %3412 = vmatmul.mubr.msk.bf16.vlgmr.msra.gmra.mrb[24].mxu0 %vm1111_vm3, %v1817_v46  ;;  %v3524_v37 = vld [vmem:[%s3881_s3 + $0x4] ss:$16 sps:$4 sm:$0xff]  }
 0xaad   : > { %3437 = vmatprep.mubr.msk.bf16.mxu0 %vm3732_vm0, %v3730_v6  ;;  %3422 = vmatpush3.bf16.msra.mxu0 %v3514_v47 }
 0xaae   : > { %v4178_v49 = vadd.f32 %v1814_v16, %v4138_v58  ;;  %v1818_v51 = vpack.c.bf16 %v1814_v16, %v1814_v16  ;;  %3423 = vmatprep.subr.bf16.mxu0 %v3730_v6  ;;  %v3517_v58 = vld [vmem:[%s3853_s20 + $0x18] sm:$0xff]   ;;  %2326 = vmatprep.subr.bf16.mxu1 %v3524_v37  ;;  %v3570_v37 = vld [vmem:[%s3892_s1 + $0x40] sm:$0xff]  }
 0xab0   : > { %3418 = vmatmul.mubr.msk.bf16.vlgmr.msra.gmra.mrb[40].mxu1 %vm1111_vm3, %v1818_v51 }
 0xab1   : > { %2358 = vmatprep.mubr.bf16.mxu1 %v3731_v32  ;;  %3424 = vmatpush3.bf16.msra.mxu0 %v3515_v54 }
 0xab2   : > { %3425 = vmatprep.subr.bf16.mxu0 %v3730_v6  ;;  %2327 = vmatpush1.bf16.msra.mxu1 %v3522_v4 }
 0xab3   : > { %2328 = vmatprep.subr.bf16.mxu1 %v3530_v39  ;;  %v3573_v39 = vld [vmem:[%s3892_s1 + $0x80] sm:$0xff]  }
 0xab5   : > { %3426 = vmatpush3.bf16.msra.mxu0 %v3516_v55  ;;  %v3536_v55 = vld [vmem:[%s3881_s3 + $0x44] ss:$16 sps:$4 sm:$0xff]  }
 0xab6   : > { %3427 = vmatprep.subr.bf16.mxu0 %v3730_v6  ;;  %2329 = vmatpush1.bf16.msra.mxu1 %v3528_v41  ;;  %v3575_v41 = vld [vmem:[%s3892_s1 + $0xc8] sm:$0xff]  }
 0xab7   : > { %2330 = vmatprep.subr.bf16.mxu1 %v3536_v55  ;;  %v3585_v55 = vld [vmem:[%s3892_s1 + $0x98] sm:$0xff]  }
 0xab9   : > { %3428 = vmatpush3.bf16.msra.mxu0 %v3517_v58  ;;  %v3539_v58 = vld [vmem:[%s3881_s3 + $0x4c] ss:$16 sps:$4 sm:$0xff]  }
 0xaba   : > { %3429 = vmatprep.subr.bf16.mxu0 %v3730_v6 }
 0xabd   : > { %3430 = vmatpush3.bf16.msra.mxu0 %v3518_v53  ;;  %v3534_v53 = vld [vmem:[%s3881_s3 + $0x40] ss:$16 sps:$4 sm:$0xff]  }
 0xabe   : > { %3431 = vmatprep.subr.bf16.mxu0 %v3730_v6  ;;  %2331 = vmatpush1.bf16.msra.mxu1 %v3534_v53  ;;  %v3587_v53 = vld [vmem:[%s3892_s1 + $0xe0] sm:$0xff]  }
 0xac1   : > { %3432 = vmatpush3.bf16.msra.mxu0 %v3519_v44  ;;  %v3537_v44 = vld [vmem:[%s3881_s3 + $0x48] ss:$16 sps:$4 sm:$0xff]  }
 0xac2   : > { %3433 = vmatprep.subr.bf16.mxu0 %v3730_v6 }
 0xac5   : > { %3434 = vmatpush3.bf16.msra.mxu0 %v3520_v62  ;;  %v3542_v62 = vld [vmem:[%s3881_s3 + $0x64] ss:$16 sps:$4 sm:$0xff]  }
 0xac6   : > { %3435 = vmatprep.subr.bf16.mxu0 %v3730_v6  ;;  %v1928_v6 = vpop.permute.xlu1 %1927  ;;  %2332 = vmatprep.subr.bf16.mxu1 %v3542_v62  ;;  %v3589_v62 = vld [vmem:[%s3892_s1 + $0xa0] sm:$0xff]  }
 0xac7   : > { %v1945_v26 = vsel %vm1941_vm4, %v1940_v25, %v1928_v6  ;;  %v3561_v6 = vld [vmem:[%s3881_s3 + $0xc8] ss:$16 sps:$4 sm:$0xff]  }
 0xac9   : > { %3436 = vmatpush3.bf16.msra.mxu0 %v3521_v50  ;;  %v3545_v50 = vld [vmem:[%s3881_s3 + $0x6c] ss:$16 sps:$4 sm:$0xff]  }
 0xaca   : > { %2369 = vmatprep.subr.bf16.mxu0 %v3527_v38  ;;  %v3572_v38 = vld [vmem:[%s3892_s1] sm:$0xff]  }
 0xb7f   : > { %v1861_v60 = vpop.f32.mrb[24].mxu0 }
 0xb80   : > { %v1915_v63 = vpack.c.bf16 %v1861_v60, %v1861_v60  ;;  %v3413_v1 = vpop.f32.mrb[25].mxu0  ;;  %v3540_v60 = vld [vmem:[%s3881_s3 + $0x60] ss:$16 sps:$4 sm:$0xff]  }
 0xb81   : > { %v1864_v2 = vpop.f32.mrb[26].mxu0  ;;  %2333 = vmatpush1.bf16.msra.mxu1 %v3540_v60  ;;  %v3548_v1 = vld [vmem:[%s3881_s3 + $0x84] ss:$16 sps:$4 sm:$0xff]   ;;  %v3591_v60 = vld [vmem:[%s3892_s1 + $0xe8] sm:$0xff]  }
 0xb82   : > { %1931 = vrot.lane.b32.xlu0 %v1915_v63, %s3733_s15  ;;  %v3414_v3 = vpop.f32.mrb[27].mxu0  ;;  %v3543_v63 = vld [vmem:[%s3881_s3 + $0x68] ss:$16 sps:$4 sm:$0xff]   ;;  %v3551_v2 = vld [vmem:[%s3881_s3 + $0x8c] ss:$16 sps:$4 sm:$0xff]   ;;  %2334 = vmatprep.subr.bf16.mxu1 %v3548_v1 }
 0xb83   : > { %v1909_v5 = vpop.f32.mrb[40].mxu1  ;;  %v3546_v3 = vld [vmem:[%s3881_s3 + $0x80] ss:$16 sps:$4 sm:$0xff]   ;;  %v3593_v1 = vld [vmem:[%s3892_s1 + $0xa8] sm:$0xff]  }
 0xb84   : > { %v1916_v8 = vpack.c.bf16 %v1909_v5, %v1909_v5  ;;  %v3419_v9 = vpop.f32.mrb[41].mxu1  ;;  %v3549_v5 = vld [vmem:[%s3881_s3 + $0x88] ss:$16 sps:$4 sm:$0xff]  }
 0xb85   : > { %v1912_v10 = vpop.f32.mrb[42].mxu1  ;;  %2335 = vmatpush1.bf16.msra.mxu1 %v3546_v3  ;;  %v3557_v9 = vld [vmem:[%s3881_s3 + $0xac] ss:$16 sps:$4 sm:$0xff]   ;;  %v3595_v3 = vld [vmem:[%s3892_s1 + $0xf0] sm:$0xff]  }
 0xb86   : > { %1933 = vrot.lane.b32.xlu1 %v1916_v8, %s3733_s15  ;;  %v3420_v12 = vpop.f32.mrb[43].mxu1  ;;  %v3554_v8 = vld [vmem:[%s3881_s3 + $0xa4] ss:$16 sps:$4 sm:$0xff]   ;;  %v3552_v10 = vld [vmem:[%s3881_s3 + $0xa0] ss:$16 sps:$4 sm:$0xff]  }
 0xb87   : > { %v3555_v12 = vld [vmem:[%s3881_s3 + $0xa8] ss:$16 sps:$4 sm:$0xff]   ;;  %2336 = vmatprep.subr.bf16.mxu1 %v3554_v8  ;;  %v3597_v8 = vld [vmem:[%s3892_s1 + $0xb0] sm:$0xff]  }
 0xb89   : > { %2337 = vmatpush1.bf16.msra.mxu1 %v3552_v10  ;;  %v3599_v10 = vld [vmem:[%s3892_s1 + $0xf8] sm:$0xff]  }
 0xb8a   : > { %2338 = vmatprep.subr.bf16.mxu1 %v3560_v13  ;;  %v3601_v13 = vld [vmem:[%s3892_s1 + $0xb8] sm:$0xff]  }
 0xb8d   : > { %2339 = vmatpush1.bf16.msra.mxu1 %v3558_v18  ;;  %v2160_v18 = vsub.s32 3, %v3972_v56 }
 0xb8e   : > { %2340 = vmatprep.subr.bf16.mxu1 %v3566_v19 }
 0xbf4   : > { %v1932_v23 = vpop.permute.xlu0 %1931 }
 0xbf5   : > { %v1948_v29 = vsel %vm1946_vm5, %v1943_v27, %v1932_v23  ;;  %v3564_v23 = vld [vmem:[%s3881_s3 + $0xe0] ss:$16 sps:$4 sm:$0xff]  }
 0xbf6   : > { %2341 = vmatpush1.bf16.msra.mxu1 %v3564_v23 }
 0xbf7   : > { %3261 = vmatprep.subr.bf16.mxu1 %v3570_v37 }
 0xbf8   : > { %v1934_v28 = vpop.permute.xlu1 %1933 }
 0xbf9   : > { %v1950_v30 = vsel %vm1946_vm5, %v1945_v26, %v1934_v28 }
 0xbfa   : > { %v3126_v31 = vcombine.low %v1948_v29, %v1950_v30 }
 0xbfc   : > { %3438 = vmatmul.mubr.bf16.vlgmr.msra.gmra.mrb[28].mxu0 %v3126_v31 }
 0xbfd   : > { %2401 = vmatprep.mubr.bf16.mxu0 %v3731_v32  ;;  %v3675_v32 = vld [vmem:[#allocation2 + $0x8] sm:$0xff]  ;;  %2370 = vmatpush1.bf16.msra.mxu0 %v3525_v21  ;;  %v3571_v21 = vld [vmem:[%s3892_s1 + $0xc0] sm:$0xff]  }
 0xbfe   : > { %2371 = vmatprep.subr.bf16.mxu0 %v3533_v40  ;;  %v3574_v40 = vld [vmem:[%s3892_s1 + $0x48] sm:$0xff]  }
 0xc01   : > { %2372 = vmatpush1.bf16.msra.mxu0 %v3531_v42  ;;  %v3576_v42 = vld [vmem:[%s3892_s1 + $0x8] sm:$0xff]  }
 0xc02   : > { %2373 = vmatprep.subr.bf16.mxu0 %v3539_v58  ;;  %v3586_v58 = vld [vmem:[%s3892_s1 + $0x60] sm:$0xff]  }
 0xc05   : > { %2374 = vmatpush1.bf16.msra.mxu0 %v3537_v44  ;;  %v3588_v44 = vld [vmem:[%s3892_s1 + $0x20] sm:$0xff]  }
 0xc06   : > { %2375 = vmatprep.subr.bf16.mxu0 %v3545_v50  ;;  %v3590_v50 = vld [vmem:[%s3892_s1 + $0x68] sm:$0xff]  }
 0xc09   : > { %2376 = vmatpush1.bf16.msra.mxu0 %v3543_v63  ;;  %v3592_v63 = vld [vmem:[%s3892_s1 + $0x28] sm:$0xff]  }
 0xc0a   : > { %2377 = vmatprep.subr.bf16.mxu0 %v3551_v2  ;;  %v3594_v2 = vld [vmem:[%s3892_s1 + $0x70] sm:$0xff]  }
 0xc0d   : > { %2378 = vmatpush1.bf16.msra.mxu0 %v3549_v5  ;;  %v3596_v5 = vld [vmem:[%s3892_s1 + $0x30] sm:$0xff]  }
 0xc0e   : > { %2379 = vmatprep.subr.bf16.mxu0 %v3557_v9  ;;  %v3598_v9 = vld [vmem:[%s3892_s1 + $0x78] sm:$0xff]  }
 0xc11   : > { %2380 = vmatpush1.bf16.msra.mxu0 %v3555_v12  ;;  %v3600_v12 = vld [vmem:[%s3892_s1 + $0x38] sm:$0xff]  }
 0xc12   : > { %2381 = vmatprep.subr.bf16.mxu0 %v3563_v17  ;;  %v2144_v17 = vld [vmem:[%s3887_s24] sm:$0xf] }
 0xc13   : > { %v2157_v19 = vrot.slane %v2144_v17, %v793_v59  ;;  %v2161_v23 = vrot.slane %v2144_v17, %v2160_v18 }
 0xc15   : > { %2382 = vmatpush1.bf16.msra.mxu0 %v3561_v6  ;;  %v2149_v6 = vrot.slane %v2144_v17, %v785_v61 }
 0xc16   : > { %2383 = vmatprep.subr.bf16.mxu0 %v3569_v22  ;;  %v2153_v22 = vrot.slane %v2144_v17, %v789_v57 }
 0xc19   : > { %2384 = vmatpush1.bf16.msra.mxu0 %v3567_v24 }
 0xc1a   : > { %3283 = vmatprep.subr.bf16.mxu0 %v3571_v21 }
 0xccf   : > { %v2062_v14 = vpop.f32.mrb[28].mxu0 }
 0xcd0   : > { %v2063_v33 = vadd.f32 %v3125_v7, %v2062_v14  ;;  %v3439_v34 = vpop.f32.mrb[29].mxu0  ;;  %v3135_v14 = vld [vmem:[%s4413_s30] ss:$0 sm:$0xff] }
 0xcd1   : > { %v2065_v35 = vpop.f32.mrb[30].mxu0 }
 0xcd2   : > { %v4211_v52 = vadd.f32 %v3674_v36, %v2063_v33  ;;  %v2066_v11 = vadd.f32 %v3125_v7, %v2065_v35  ;;  %v3440_v0 = vpop.f32.mrb[31].mxu0  ;;  %v3136_v36 = vld [vmem:[%s4414_s23] ss:$0 sm:$0xff] }
 0xcd4   : > { %v4213_v15 = vadd.f32 %v3675_v32, %v2066_v11  ;;  %2071 = vadd.xlane.f32.xlu0 %v4211_v52 }
 0xcd6   : > { %2073 = vadd.xlane.f32.xlu1 %v4213_v15 }
 0xd61   : > { %v2072_v43 = vpop.xlane.xlu0 %2071 }
 0xd62   : > { %v2075_v45 = vmul.f32 0.0078125, %v2072_v43  ;;  %v3577_v43 = vld [vmem:[%s3892_s1 + $0x88] sm:$0xff]  }
 0xd63   : > { %v2074_v46 = vpop.xlane.xlu1 %2073 }
 0xd64   : > { %v4226_v48 = vsub.f32 %v4211_v52, %v2075_v45  ;;  %v2076_v16 = vmul.f32 0.0078125, %v2074_v46  ;;  %v3578_v45 = vld [vmem:[%s3892_s1 + $0x50] sm:$0xff]  }
 0xd65   : > { %v3579_v46 = vld [vmem:[%s3892_s1 + $0xd0] sm:$0xff]  }
 0xd66   : > { %v4229_v51 = vsub.f32 %v4213_v15, %v2076_v16  ;;  %v2079_v47 = vmul.f32 %v4226_v48, %v4226_v48  ;;  %v3581_v16 = vld [vmem:[%s3892_s1 + $0x90] sm:$0xff]  }
 0xd68   : > { %2081 = vadd.xlane.f32.xlu0 %v2079_v47  ;;  %v2080_v54 = vmul.f32 %v4229_v51, %v4229_v51  ;;  %v3583_v47 = vld [vmem:[%s3892_s1 + $0xd8] sm:$0xff]  }
 0xd6c   : > { %2083 = vadd.xlane.f32.xlu0 %v2080_v54  ;;  %v3584_v54 = vld [vmem:[%s3892_s1 + $0x18] sm:$0xff]  }
 0xdf5   : > { %v2082_v25 = vpop.xlane.xlu0 %2081 }
 0xdf6   : > { %v2085_v26 = vmul.f32 0.0078125, %v2082_v25 }
 0xdf8   : > { %v2087_v27 = vadd.f32 1e-05, %v2085_v26 }
 0xdf9   : > { %v2084_v28 = vpop.xlane.xlu0 %2083 }
 0xdfa   : > { %3638 = vrsqrt.f32 %v2087_v27  ;;  %v2086_v29 = vmul.f32 0.0078125, %v2084_v28 }
 0xdfc   : > { %v2088_v30 = vadd.f32 1e-05, %v2086_v29 }
 0xdfe   : > { %3640 = vrsqrt.f32 %v2088_v30 }
 0xe04   : > { %v3639_v31 = vpop.eup %3638 }
 0xe05   : > { %v2091_v7 = vmul.f32 %v3639_v31, %v4226_v48  ;;  %v3580_v48 = vld [vmem:[%s3892_s1 + $0x10] sm:$0xff]  }
 0xe07   : > { %v2100_v35 = vmul.f32 %v3135_v14, %v2091_v7 }
 0xe08   : > { %v3641_v33 = vpop.eup %3640 }
 0xe09   : > { %v2092_v34 = vmul.f32 %v3641_v33, %v4229_v51  ;;  %v2109_v0 = vadd.f32 %v3136_v36, %v2100_v35  ;;  %v3582_v51 = vld [vmem:[%s3892_s1 + $0x58] sm:$0xff]  }
 0xe0b   : > { %v2101_v11 = vmul.f32 %v3135_v14, %v2092_v34 }
 0xe0d   : > { %v2110_v32 = vadd.f32 %v3136_v36, %v2101_v11 }
 0xe0f   : > { %v2111_v4 = vpack.c.bf16 %v2110_v32, %v2109_v0 }
 0xe11   : > { %2359 = vmatmul.mubr.bf16.vlgmr.msra.gmra.mrb[44].mxu1 %v2111_v4  ;;  %2402 = vmatmul.mubr.bf16.vlgmr.msra.gmra.mrb[32].mxu0 %v2111_v4 }
 0xe12   : > { %3262 = vmatpush3.bf16.msra.mxu1 %v3572_v38  ;;  %3284 = vmatpush3.bf16.msra.mxu0 %v3573_v39 }
 0xe13   : > { %3263 = vmatprep.subr.bf16.mxu1 %v3574_v40  ;;  %3285 = vmatprep.subr.bf16.mxu0 %v3575_v41 }
 0xe16   : > { %3264 = vmatpush3.bf16.msra.mxu1 %v3576_v42  ;;  %3286 = vmatpush3.bf16.msra.mxu0 %v3577_v43 }
 0xe17   : > { %3265 = vmatprep.subr.bf16.mxu1 %v3578_v45  ;;  %3287 = vmatprep.subr.bf16.mxu0 %v3579_v46 }
 0xe1a   : > { %3266 = vmatpush3.bf16.msra.mxu1 %v3580_v48  ;;  %3288 = vmatpush3.bf16.msra.mxu0 %v3581_v16 }
 0xe1b   : > { %3267 = vmatprep.subr.bf16.mxu1 %v3582_v51  ;;  %3289 = vmatprep.subr.bf16.mxu0 %v3583_v47 }
 0xe1e   : > { %3268 = vmatpush3.bf16.msra.mxu1 %v3584_v54  ;;  %3290 = vmatpush3.bf16.msra.mxu0 %v3585_v55 }
 0xe1f   : > { %3269 = vmatprep.subr.bf16.mxu1 %v3586_v58  ;;  %3291 = vmatprep.subr.bf16.mxu0 %v3587_v53 }
 0xe22   : > { %3270 = vmatpush3.bf16.msra.mxu1 %v3588_v44  ;;  %3292 = vmatpush3.bf16.msra.mxu0 %v3589_v62 }
 0xe23   : > { %3271 = vmatprep.subr.bf16.mxu1 %v3590_v50  ;;  %3293 = vmatprep.subr.bf16.mxu0 %v3591_v60 }
 0xe26   : > { %3272 = vmatpush3.bf16.msra.mxu1 %v3592_v63  ;;  %3294 = vmatpush3.bf16.msra.mxu0 %v3593_v1 }
 0xe27   : > { %3273 = vmatprep.subr.bf16.mxu1 %v3594_v2  ;;  %3295 = vmatprep.subr.bf16.mxu0 %v3595_v3 }
 0xe2a   : > { %3274 = vmatpush3.bf16.msra.mxu1 %v3596_v5  ;;  %3296 = vmatpush3.bf16.msra.mxu0 %v3597_v8 }
 0xe2b   : > { %3275 = vmatprep.subr.bf16.mxu1 %v3598_v9  ;;  %3297 = vmatprep.subr.bf16.mxu0 %v3599_v10 }
 0xe2e   : > { %3276 = vmatpush3.bf16.msra.mxu1 %v3600_v12  ;;  %3298 = vmatpush3.bf16.msra.mxu0 %v3601_v13 }
 0xee4   : > { %v2360_v24 = vpop.f32.mrb[44].mxu1  ;;  %v2403_v25 = vpop.f32.mrb[32].mxu0 }
 0xee5   : > { %v4311_v26 = vadd.f32 %v2360_v24, %v2149_v6  ;;  %v4313_v27 = vadd.f32 %v2403_v25, %v2157_v19  ;;  %v2362_v28 = vpop.f32.mrb[45].mxu1  ;;  %v2405_v29 = vpop.f32.mrb[33].mxu0 }
 0xee6   : > { %v4315_v30 = vadd.f32 %v2362_v28, %v2153_v22  ;;  %v4317_v31 = vadd.f32 %v2405_v29, %v2161_v23  ;;  %v2364_v61 = vpop.f32.mrb[46].mxu1  ;;  %v2407_v7 = vpop.f32.mrb[34].mxu0 }
 0xee7   : > { %v2412_v59 = vmul.f32 -1.702, %v4311_v26  ;;  %v2414_v56 = vmul.f32 -1.702, %v4313_v27  ;;  %v2365_v57 = vadd.f32 %v2364_v61, %v2149_v6  ;;  %v2408_v14 = vadd.f32 %v2407_v7, %v2157_v19  ;;  %v2366_v33 = vpop.f32.mrb[47].mxu1  ;;  %v2409_v34 = vpop.f32.mrb[35].mxu0 }
 0xee8   : > { %v2413_v35 = vmul.f32 -1.702, %v4315_v30  ;;  %v2415_v36 = vmul.f32 -1.702, %v4317_v31  ;;  %v2367_v11 = vadd.f32 %v2366_v33, %v2153_v22  ;;  %v2410_v0 = vadd.f32 %v2409_v34, %v2161_v23 }
 0xee9   : > { %v2420_v32 = vmul.f32 1.442695, %v2412_v59  ;;  %v2424_v4 = vmul.f32 1.442695, %v2414_v56  ;;  %v2416_v37 = vmul.f32 -1.702, %v2365_v57 }
 0xeea   : > { %v2422_v21 = vmul.f32 1.442695, %v2413_v35  ;;  %v2426_v38 = vmul.f32 1.442695, %v2415_v36  ;;  %v2418_v39 = vmul.f32 -1.702, %v2408_v14 }
 0xeeb   : > { %3642 = vpow2.f32 %v2420_v32  ;;  %v2428_v40 = vmul.f32 1.442695, %v2416_v37  ;;  %v2417_v41 = vmul.f32 -1.702, %v2367_v11  ;;  %v2419_v42 = vmul.f32 -1.702, %v2410_v0 }
 0xeec   : > { %3644 = vpow2.f32 %v2424_v4  ;;  %v2432_v43 = vmul.f32 1.442695, %v2418_v39 }
 0xeed   : > { %3646 = vpow2.f32 %v2422_v21  ;;  %v2430_v45 = vmul.f32 1.442695, %v2417_v41  ;;  %v2434_v46 = vmul.f32 1.442695, %v2419_v42  ;;  %v2819_v41 = vmul.f32 (!%p3202_p6), 0.25, %v4172_v20 }
 0xeee   : > { %3648 = vpow2.f32 %v2426_v38  ;;  %v2820_v42 = vmul.f32 (!%p3202_p6), 0.25, %v4178_v49 }
 0xeef   : > { %3650 = vpow2.f32 %v2428_v40 }
 0xef0   : > { %3652 = vpow2.f32 %v2432_v43  ;;  %v2821_v43 = vsel (!%p3202_p6), %vm1111_vm3, %v2819_v41, 0.0 }
 0xef1   : > { %3654 = vpow2.f32 %v2430_v45  ;;  %v2822_v45 = vsel (!%p3202_p6), %vm1111_vm3, %v2820_v42, 0.0  ;;  %2823 = vst [vmem:[#allocation3] sm:$0xff] (!%p3202_p6), %v2821_v43 }
 0xef2   : > { %3656 = vpow2.f32 %v2434_v46  ;;  %2824 = vst [vmem:[#allocation3 + $0x8] sm:$0xff] (!%p3202_p6), %v2822_v45 }
 0xef5   : > { %v3643_v48 = vpop.eup %3642 }
 0xef6   : > { %v3645_v16 = vpop.eup %3644  ;;  %v2436_v51 = vadd.f32 1.0, %v3643_v48 }
 0xef7   : > { %v3647_v47 = vpop.eup %3646  ;;  %v2438_v54 = vadd.f32 1.0, %v3645_v16 }
 0xef8   : > { %v3649_v55 = vpop.eup %3648  ;;  %3658 = vrcp.f32 %v2436_v51  ;;  %v2437_v58 = vadd.f32 1.0, %v3647_v47 }
 0xef9   : > { %v3651_v53 = vpop.eup %3650  ;;  %3660 = vrcp.f32 %v2438_v54  ;;  %v2439_v44 = vadd.f32 1.0, %v3649_v55 }
 0xefa   : > { %v3653_v62 = vpop.eup %3652  ;;  %3662 = vrcp.f32 %v2437_v58  ;;  %v2440_v50 = vadd.f32 1.0, %v3651_v53 }
 0xefb   : > { %v3655_v60 = vpop.eup %3654  ;;  %3664 = vrcp.f32 %v2439_v44  ;;  %v2442_v63 = vadd.f32 1.0, %v3653_v62 }
 0xefc   : > { %v3657_v1 = vpop.eup %3656  ;;  %3666 = vrcp.f32 %v2440_v50  ;;  %v2441_v2 = vadd.f32 1.0, %v3655_v60 }
 0xefd   : > { %3668 = vrcp.f32 %v2442_v63  ;;  %v2443_v3 = vadd.f32 1.0, %v3657_v1 }
 0xefe   : > { %3670 = vrcp.f32 %v2441_v2 }
 0xeff   : > { %3672 = vrcp.f32 %v2443_v3 }
 0xf02   : > { %v3659_v5 = vpop.eup %3658 }
 0xf03   : > { %v3661_v8 = vpop.eup %3660  ;;  %v2452_v17 = vmul.f32 %v3659_v5, %v4311_v26 }
 0xf04   : > { %v3663_v9 = vpop.eup %3662  ;;  %v2454_v19 = vmul.f32 %v3661_v8, %v4313_v27  ;;  %v3169_v27 = vld [vmem:[%s684_s19] ss:$0 sm:$0xff] }
 0xf05   : > { %v3665_v10 = vpop.eup %3664  ;;  %v2453_v24 = vmul.f32 %v3663_v9, %v4315_v30 }
 0xf06   : > { %v3667_v12 = vpop.eup %3666  ;;  %v2455_v29 = vmul.f32 %v3665_v10, %v4317_v31 }
 0xf07   : > { %v3669_v13 = vpop.eup %3668  ;;  %v2456_v18 = vmul.f32 %v3667_v12, %v2365_v57 }
 0xf08   : > { %v3671_v6 = vpop.eup %3670  ;;  %v2458_v22 = vmul.f32 %v3669_v13, %v2408_v14 }
 0xf09   : > { %v3673_v23 = vpop.eup %3672  ;;  %v2460_v25 = vpack.c.bf16 %v2456_v18, %v2452_v17  ;;  %v2457_v28 = vmul.f32 %v3671_v6, %v2367_v11 }
 0xf0a   : > { %v2462_v61 = vpack.c.bf16 %v2458_v22, %v2454_v19  ;;  %v2459_v7 = vmul.f32 %v3673_v23, %v2410_v0 }
 0xf0b   : > { %v2461_v59 = vpack.c.bf16 %v2457_v28, %v2453_v24 }
 0xf0c   : > { %v2463_v56 = vpack.c.bf16 %v2459_v7, %v2455_v29 }
 0xf0d   : > { %2759 = vmatprep.mubr.bf16.mxu1 %v2461_v59 }
 0xf0e   : > { %2800 = vmatprep.mubr.bf16.mxu0 %v2463_v56  ;;  %2760 = vmatmul.mubr.bf16.vlgmr.msra.gmra.mrb[48].mxu1 %v2460_v25 }
 0xf0f   : > { %2801 = vmatmul.mubr.bf16.vlgmr.msra.gmra.mrb[36].mxu0 %v2462_v61 }
 0xfe1   : > { %v3277_v26 = vpop.f32.mrb[48].mxu1 }
 0xfe2   : > { %v3299_v57 = vpop.f32.mrb[36].mxu0  ;;  %v3278_v30 = vpop.f32.mrb[49].mxu1 }
 0xfe3   : > { %v3279_v14 = vadd.f32 %v3278_v30, %v3277_v26  ;;  %v3300_v33 = vpop.f32.mrb[37].mxu0  ;;  %v3280_v31 = vpop.f32.mrb[50].mxu1 }
 0xfe4   : > { %v3301_v34 = vadd.f32 %v3300_v33, %v3299_v57  ;;  %v3302_v35 = vpop.f32.mrb[38].mxu0  ;;  %v3281_v36 = vpop.f32.mrb[51].mxu1 }
 0xfe5   : > { %v2762_v11 = vadd.f32 %v3279_v14, %v3169_v27  ;;  %v3282_v0 = vadd.f32 %v3281_v36, %v3280_v31  ;;  %v3303_v32 = vpop.f32.mrb[39].mxu0 }
 0xfe6   : > { %v3304_v4 = vadd.f32 %v3303_v32, %v3302_v35 }
 0xfe7   : > { %v2803_v37 = vadd.f32 %v3301_v34, %v2762_v11  ;;  %v2765_v21 = vadd.f32 %v3282_v0, %v3169_v27  ;;  %2818 = sbr.rel (%p3202_p6) target bundleno = 4078 (0xfee), region = 80 }
 0xfe9   : > { %v2809_v38 = vadd.f32 %v2803_v37, %v4211_v52  ;;  %v2806_v39 = vadd.f32 %v3304_v4, %v2765_v21 }
 0xfeb   : > { %2811 = vst [vmem:[#allocation2] sm:$0xff] %v2809_v38  ;;  %2813 = vst [vmem:[%s3902_s25] sm:$0xff] %v2809_v38  ;;  %v2810_v40 = vadd.f32 %v2806_v39, %v4213_v15 }
 0xfed   : > { %2812 = vst [vmem:[#allocation2 + $0x8] sm:$0xff] %v2810_v40  ;;  %2814 = vst [vmem:[%s3902_s25 + $0x8] sm:$0xff] %v2810_v40 }
 0xfee PF: > { %s4415_s18 = sld [smem:[#allocation7_spill]]  ;;  %s3736_s29 = smov [#allocation3]  }
 0xfef   : > { %s2847_s25 = sshll.u32 %s3736_s29, 4  ;;  %s2848_s25 = int_to_ptr.vmem [resolvable:$true] %s2847_s25 }
 0xff0   : > { %s3676_s26 = scalar_lea.vmem %s2848_s25, 256  ;;  %p3683_p11 = scmp.lt.s32.totalorder %s2848_s25, %s2848_s25 }
 0xff1   : > { %p3677_p8 = scmp.ne.s32.totalorder %s2848_s25, %s3676_s26  ;;  %p3684_p12 = scmp.lt.s32.totalorder %s3676_s26, %s3676_s26 }
 0xff3   : > { %p3685_p13 = por %p3684_p12, %p3683_p11 }
 0xff4   : > { %s4416_s19 = sadd.s32 4294967295, %s4415_s18  }
 0xff5   : > { %p4343_p7 = scmp.eq.s32.totalorder %s4416_s19, 1 }
 0xff7   : > { %p3678_p9 = pnand %p3677_p8, %p4343_p7 }
 0xff9   : > { %p3679_p10 = pneg %p3678_p9 }
 0xffb   : > { %p3686_p0 = pnand %p3685_p13, %p3679_p10 }
 0xffd   : > { %3689 = shalt.err (!%p3686_p0)
}
 0xffe   : > { %s4418_s22 = sld [smem:[#allocation13_spill]] }
0x1004   : > { %s3690_s14 = scalar_lea.hbm %s4418_s22, 256 }
0x1005   : > { %p3691_p1 = scmp.ne.s32.totalorder %s4418_s22, %s3690_s14  ;;  %p3696_p4 = scmp.lt.u32.totalorder %s3690_s14, %s4418_s22 }
0x1007   : > { %p3692_p2 = pnand %p3691_p1, %p4343_p7 }
0x1009   : > { %p3693_p3 = pneg %p3692_p2 }
0x100b   : > { %p3698_p5 = pnand %p3696_p4, %p3693_p3 }
0x100d   : > { %3701 = shalt.err (!%p3698_p5)
}
0x100e   : > { %s3737_s5 = smov 128   ;;  %s3738_s30 = smov 8  }
0x100f   : > { %3444 = dma.vmem_to_hbm [thread:$0]  (%p4343_p7), %s2848_s25, 256, %s4418_s22, [#allocation4], %s3737_s5, %s3737_s5, %s3738_s30  }
0x1010   : > { %3715 = dma.done.wait (%p4343_p7), [#allocation4], 256  }
0x1011   : > { %3717 = vsyncadd (%p4343_p7), [#allocation4], 4294967040 }
0x1012 PF: > { %s4419_s23 = sld [smem:[#allocation7_spill]]  ;;  %s4420_s29 = sld [smem:[#allocation6_spill]] }
0x1013   : > { %s4421_s30 = sld [smem:[#allocation8_spill]] }
0x1018   : > { %s26_s15 = sadd.s32 1, %s4419_s23  }
0x1019   : > { %p23_p6 = scmp.ge.s32.totalorder %s26_s15, 4  }
0x101b   :  { %25 = sbr.rel (!%p23_p6) target bundleno = 8 (0x8), region = 156 }
0x1022   :  { %2875 = vsyncpa [#allocation4], 1 }
0x1023   :  { %2877 = vsyncpa [#allocation4 + $0x1], 1 }

</bundles_post_ra>
